<compile_context>
chip_gen: v7x
topology: tpu7x:2x2x1
jax: 0.10.0
libtpu: 0.0.40
codegen_flags: <defaults>
</compile_context>

<pallas_src>
import functools
import math
import warnings

import jax
import jax.numpy as jnp
from jax.experimental import pallas as pl
from jax.experimental.pallas import tpu as pltpu

LN_EPS = 1e-12            # the torch module builds nn.LayerNorm(dim, eps=1e-12)
_NEG_BIG = -1e30
_INV_SQRT2 = 0.7071067811865476

# Benign if XLA ever declines to reuse the donated x buffer; correctness unaffected.
warnings.filterwarnings("ignore", message="Some donated buffers were not usable")


# ----------------------------------------------------------------------------
# Fused kernel: one [R, C] row block (R = bb * t * l rows, t-major) per step.
# ----------------------------------------------------------------------------
def _encoder_mo_layer_kernel(
        x_ref,                                      # (R, C)
        sp_bias_ref, tp_bias_ref,                   # (R, H*R) f32 additive group masks
        rowmask_ref, colmask_ref,                   # (C, H*R) / (H*R, C) bf16 head block-diag
        sp_w_ref, sp_b_ref, sp_wo_ref, sp_bo_ref,   # spatial MHA
        tp_w_ref, tp_b_ref, tp_wo_ref, tp_bo_ref,   # temporal MHA
        lng_ref, lnb_ref,                           # (3, C) LayerNorm affine params
        w1_ref, b1_ref, w2_ref, b2_ref,             # MLP
        o_ref):                                     # (R, C)
    R, C = x_ref.shape
    H = rowmask_ref.shape[1] // R

    x = x_ref[...]
    rowmask = rowmask_ref[...]
    colmask = colmask_ref[...]

    def layer_norm(v, idx):
        g = lng_ref[idx]
        b = lnb_ref[idx]
        mu = jnp.mean(v, axis=-1, keepdims=True)
        var = jnp.mean(jnp.square(v - mu), axis=-1, keepdims=True)
        return (v - mu) * jax.lax.rsqrt(var + LN_EPS) * g + b

    def mha(xin, ln_idx, w_ref, b_ref, wo_ref, bo_ref, bias_ref):
        # Single dense QKV projection (Q scale pre-folded): one full-width push.
        z = layer_norm(xin, ln_idx).astype(jnp.bfloat16)
        qkv = jnp.dot(z, w_ref[...], preferred_element_type=jnp.float32) + b_ref[...]
        q = qkv[:, 0 * C:1 * C].astype(jnp.bfloat16)
        k = qkv[:, 1 * C:2 * C]
        v = qkv[:, 2 * C:3 * C].astype(jnp.bfloat16)

        # Pack heads along lanes: kblk[c, h*R + r] = k[r, c] masked to head h's
        # D-slice of c, so one [R,C]x[C,H*R] push gives every per-head score.
        kblk = jnp.concatenate([k.T.astype(jnp.bfloat16)] * H, axis=1) * rowmask
        s = jnp.dot(q, kblk, preferred_element_type=jnp.float32) + bias_ref[...]
        # Row max over all packed heads is still a valid stabilizer (>= per-head max).
        s = s - jnp.max(s, axis=-1, keepdims=True)
        p = jnp.exp(s).astype(jnp.bfloat16)      # masked entries underflow to exactly 0

        # [V_blockdiag | head-segment ones]: a single [R,H*R]x[H*R,2C] push gives
        # P@V (heads already merged along lanes) and the softmax denominator.
        vtile = jnp.concatenate([v] * H, axis=0)
        vaug = jnp.concatenate([vtile * colmask, colmask], axis=1)
        ov = jnp.dot(p, vaug, preferred_element_type=jnp.float32)
        o = ov[:, :C] * pl.reciprocal(ov[:, C:], approx=True)

        # Heads are already concatenated along lanes -> one [R,C]x[C,C] out-proj.
        return jnp.dot(o.astype(jnp.bfloat16), wo_ref[...],
                       preferred_element_type=jnp.float32) + bo_ref[...]

    # TODO(synk): attn_mask is unsupported (module is called with attn_mask=None);
    #             a user mask would simply be folded into sp_bias / tp_bias host-side.
    x = x + mha(x, 0, sp_w_ref, sp_b_ref, sp_wo_ref, sp_bo_ref, sp_bias_ref)
    x = x + mha(x, 1, tp_w_ref, tp_b_ref, tp_wo_ref, tp_bo_ref, tp_bias_ref)

    # MLP (exact erf GELU) + residual.
    z = layer_norm(x, 2).astype(jnp.bfloat16)
    h = jnp.dot(z, w1_ref[...], preferred_element_type=jnp.float32) + b1_ref[...]
    h = 0.5 * h * (1.0 + jax.lax.erf(h * jnp.float32(_INV_SQRT2)))
    x = x + jnp.dot(h.astype(jnp.bfloat16), w2_ref[...],
                    preferred_element_type=jnp.float32) + b2_ref[...]

    o_ref[...] = x.astype(o_ref.dtype)


# ----------------------------------------------------------------------------
# Host-side weight / mask preparation + pallas_call wrapper
# ----------------------------------------------------------------------------
def _prep_mha_params(wqkv, bqkv, wout, bout, num_heads):
    """torch nn.MultiheadAttention weights -> flat, lane-dense kernel layout."""
    c = wqkv.shape[1]
    scale = 1.0 / math.sqrt(c // num_heads)
    wq, wk, wv = jnp.split(wqkv, 3, axis=0)      # each [C, C] (out, in); heads contiguous
    bq, bk, bv = jnp.split(bqkv, 3, axis=0)
    w = jnp.concatenate([wq.T * scale, wk.T, wv.T], axis=1).astype(jnp.bfloat16)  # [C, 3C]
    bqs = jnp.concatenate([bq * scale, bk, bv]).reshape(1, 3 * c).astype(jnp.float32)
    return (w, bqs,
            wout.T.astype(jnp.bfloat16),                    # [C, C]
            bout.reshape(1, c).astype(jnp.float32))


def _build_masks(bb, t, l, c, num_heads):
    """Additive group biases + head block-diagonal packing masks (constants)."""
    n = t * l
    r = bb * n                     # rows per grid step
    g = num_heads * r              # packed score lanes
    d = c // num_heads

    row = jnp.arange(r, dtype=jnp.int32)
    col = jnp.arange(g, dtype=jnp.int32)
    row_b, row_n = row // n, row % n
    col_b, col_m = (col % r) // n, (col % r) % n
    same_batch = row_b[:, None] == col_b[None, :]
    sp_ok = same_batch & ((row_n[:, None] // l) == (col_m[None, :] // l))  # same t
    tp_ok = same_batch & ((row_n[:, None] % l) == (col_m[None, :] % l))    # same l
    sp_bias = jnp.where(sp_ok, 0.0, _NEG_BIG).astype(jnp.float32)          # [r, g]
    tp_bias = jnp.where(tp_ok, 0.0, _NEG_BIG).astype(jnp.float32)

    head_of_col = col // r
    head_of_c = jnp.arange(c, dtype=jnp.int32) // d
    rowmask = (head_of_c[:, None] == head_of_col[None, :]).astype(jnp.bfloat16)  # [c, g]
    colmask = (head_of_col[:, None] == head_of_c[None, :]).astype(jnp.bfloat16)  # [g, c]
    return sp_bias, tp_bias, rowmask, colmask


def _pick_grid_steps(b):
    """One grid step per TensorCore on v7x (grid axis is 'parallel'); otherwise as
    few serial steps as possible (at most 2 batch rows folded per step so the
    packed-head score matmul stays modest)."""
    try:
        kind = jax.devices()[0].device_kind
    except Exception:
        kind = ""
    min_steps = 2 if "7" in kind else 1
    steps = max(min_steps, -(-b // 2))
    if steps > b or b % steps != 0:
        steps = b
    return steps


def encoder_mo_layer_forward(x, params, *, b, t, l, num_heads, grid_steps=None):
    """x: [b, t*l, c] -> [b, t*l, c]   (attn_mask=None, eval-mode dropout)."""
    n = t * l
    c = x.shape[-1]
    assert x.shape == (b, n, c), (x.shape, (b, n, c))
    assert c % num_heads == 0, (c, num_heads)

    steps = _pick_grid_steps(b) if grid_steps is None else grid_steps
    assert b % steps == 0, (b, steps)
    bb = b // steps
    rows = bb * n

    # TODO(synk): the additive group masks are O((bb*n)^2 * num_heads) resident f32;
    # if t*l ever grows large, generate them in-kernel from broadcasted_iota (and run
    # the spatial branch as a [t, l, c] batched attention) instead of loading them.
    sp_bias, tp_bias, rowmask, colmask = _build_masks(bb, t, l, c, num_heads)

    sp_w, sp_b, sp_wo, sp_bo = _prep_mha_params(
        params["sp_wqkv"], params["sp_bqkv"],
        params["sp_wout"], params["sp_bout"], num_heads)
    tp_w, tp_b, tp_wo, tp_bo = _prep_mha_params(
        params["tp_wqkv"], params["tp_bqkv"],
        params["tp_wout"], params["tp_bout"], num_heads)
    ln_g = jnp.stack([params["ln1_g"], params["ln2_g"], params["ln3_g"]]).astype(jnp.float32)
    ln_b = jnp.stack([params["ln1_b"], params["ln2_b"], params["ln3_b"]]).astype(jnp.float32)
    w1 = params["w1"].T.astype(jnp.bfloat16)           # [C, hidden]
    b1 = params["b1"].reshape(1, -1).astype(jnp.float32)
    w2 = params["w2"].T.astype(jnp.bfloat16)           # [hidden, C]
    b2 = params["b2"].reshape(1, -1).astype(jnp.float32)

    x2d = x.reshape(b * n, c)                           # free view; rows stay (b, t, l)-major

    operands = (x2d, sp_bias, tp_bias, rowmask, colmask,
                sp_w, sp_b, sp_wo, sp_bo,
                tp_w, tp_b, tp_wo, tp_bo,
                ln_g, ln_b, w1, b1, w2, b2)

    resident = lambda a: pl.BlockSpec(a.shape, lambda i: (0, 0))   # loaded once, fixed per step
    in_specs = ([pl.BlockSpec((rows, c), lambda i: (i, 0))]
                + [resident(a) for a in operands[1:]])

    out2d = pl.pallas_call(
        _encoder_mo_layer_kernel,
        out_shape=jax.ShapeDtypeStruct((b * n, c), x.dtype),
        grid=(steps,),
        in_specs=in_specs,
        out_specs=pl.BlockSpec((rows, c), lambda i: (i, 0)),
        input_output_aliases={0: 0},
        compiler_params=pltpu.CompilerParams(
            dimension_semantics=("parallel",)),          # row blocks shard across TCs (v7x)
    )(*operands)
    return out2d.reshape(b, n, c)


# ----------------------------------------------------------------------------
# Deterministic parameter init (synthetic; shapes follow the PyTorch module)
# ----------------------------------------------------------------------------
def init_params(key, dim, hidden_dim):
    ks = jax.random.split(key, 16)
    s = 0.05
    nrm = lambda k, shape: jax.random.normal(k, shape, jnp.float32) * s
    return {
        # spatial MultiheadAttention
        "sp_wqkv": nrm(ks[0], (3 * dim, dim)), "sp_bqkv": nrm(ks[1], (3 * dim,)),
        "sp_wout": nrm(ks[2], (dim, dim)),     "sp_bout": nrm(ks[3], (dim,)),
        # temporal MultiheadAttention
        "tp_wqkv": nrm(ks[4], (3 * dim, dim)), "tp_bqkv": nrm(ks[5], (3 * dim,)),
        "tp_wout": nrm(ks[6], (dim, dim)),     "tp_bout": nrm(ks[7], (dim,)),
        # LayerNorms (perturbed so the affine part is actually exercised)
        "ln1_g": 1.0 + nrm(ks[8], (dim,)),  "ln1_b": nrm(ks[9], (dim,)),
        "ln2_g": 1.0 + nrm(ks[10], (dim,)), "ln2_b": nrm(ks[11], (dim,)),
        "ln3_g": 1.0 + nrm(ks[12], (dim,)), "ln3_b": nrm(ks[13], (dim,)),
        # MLP
        "w1": nrm(ks[14], (hidden_dim, dim)), "b1": jnp.zeros((hidden_dim,), jnp.float32),
        "w2": nrm(ks[15], (dim, hidden_dim)), "b2": jnp.zeros((dim,), jnp.float32),
    }


# ----------------------------------------------------------------------------
# Pure-JAX reference (for correctness check)
# ----------------------------------------------------------------------------
def _ref_ln(x, g, bta):
    mu = jnp.mean(x, axis=-1, keepdims=True)
    var = jnp.mean(jnp.square(x - mu), axis=-1, keepdims=True)
    return (x - mu) / jnp.sqrt(var + LN_EPS) * g + bta


def _ref_mha(z, wqkv, bqkv, wout, bout, num_heads):
    B, L, C = z.shape
    D = C // num_heads
    qkv = jnp.einsum("blc,oc->blo", z, wqkv) + bqkv
    q, k, v = jnp.split(qkv, 3, axis=-1)
    q = q.reshape(B, L, num_heads, D).transpose(0, 2, 1, 3)
    k = k.reshape(B, L, num_heads, D).transpose(0, 2, 1, 3)
    v = v.reshape(B, L, num_heads, D).transpose(0, 2, 1, 3)
    s = jnp.einsum("bhqd,bhkd->bhqk", q, k) / math.sqrt(D)
    p = jax.nn.softmax(s, axis=-1)
    o = jnp.einsum("bhqk,bhkd->bhqd", p, v).transpose(0, 2, 1, 3).reshape(B, L, C)
    return jnp.einsum("blc,oc->blo", o, wout) + bout


def reference_forward(x, params, *, b, t, l, num_heads):
    c = x.shape[-1]
    x4 = x.reshape(b, t, l, c)
    sx = x4.reshape(b * t, l, c)
    attn = _ref_mha(_ref_ln(sx, params["ln1_g"], params["ln1_b"]),
                    params["sp_wqkv"], params["sp_bqkv"],
                    params["sp_wout"], params["sp_bout"], num_heads)
    x4 = x4 + attn.reshape(b, t, l, c)
    tx = x4.transpose(0, 2, 1, 3).reshape(b * l, t, c)
    attn = _ref_mha(_ref_ln(tx, params["ln2_g"], params["ln2_b"]),
                    params["tp_wqkv"], params["tp_bqkv"],
                    params["tp_wout"], params["tp_bout"], num_heads)
    x4 = x4 + attn.reshape(b, l, t, c).transpose(0, 2, 1, 3)
    xf = x4.reshape(b, t * l, c)
    z = _ref_ln(xf, params["ln3_g"], params["ln3_b"])
    h = jax.nn.gelu(jnp.einsum("blc,hc->blh", z, params["w1"]) + params["b1"],
                    approximate=False)
    out = jnp.einsum("blh,ch->blc", h, params["w2"]) + params["b2"]
    return xf + out


# ----------------------------------------------------------------------------
if __name__ == "__main__":
    b, t, l, dim = 2, 4, 8, 32
    hidden_dim = 64
    num_heads = 4

    key = jax.random.PRNGKey(0)
    kx, kp = jax.random.split(key)
    x = jax.random.normal(kx, (b, t * l, dim), jnp.float32)
    params = init_params(kp, dim, hidden_dim)

    ref = jax.block_until_ready(
        reference_forward(x, params, b=b, t=t, l=l, num_heads=num_heads))

    # Donating x lets input_output_aliases={0:0} reuse the input HBM buffer in place.
    fwd = jax.jit(
        functools.partial(encoder_mo_layer_forward,
                          b=b, t=t, l=l, num_heads=num_heads),
        donate_argnums=(0,))
    out = jax.block_until_ready(fwd(x, params))

    assert out.shape == (b, t * l, dim)
    max_err = float(jnp.max(jnp.abs(out - ref)))
    # tolerance covers bf16 MXU operands + the approximate (EUP) reciprocals
    assert max_err < 2e-2, f"max abs error {max_err}"
    print("KERNEL_OK")
</pallas_src>

<mosaic_0001>
module attributes {stable_mosaic.version = 11 : i64} {
  func.func @_encoder_mo_layer_kernel(%arg0: i32, %arg1: memref<64x32xf32, #tpu.memory_space<vmem>>, %arg2: memref<64x256xf32, #tpu.memory_space<vmem>>, %arg3: memref<64x256xf32, #tpu.memory_space<vmem>>, %arg4: memref<32x256xbf16, #tpu.memory_space<vmem>>, %arg5: memref<256x32xbf16, #tpu.memory_space<vmem>>, %arg6: memref<32x96xbf16, #tpu.memory_space<vmem>>, %arg7: memref<1x96xf32, #tpu.memory_space<vmem>>, %arg8: memref<32x32xbf16, #tpu.memory_space<vmem>>, %arg9: memref<1x32xf32, #tpu.memory_space<vmem>>, %arg10: memref<32x96xbf16, #tpu.memory_space<vmem>>, %arg11: memref<1x96xf32, #tpu.memory_space<vmem>>, %arg12: memref<32x32xbf16, #tpu.memory_space<vmem>>, %arg13: memref<1x32xf32, #tpu.memory_space<vmem>>, %arg14: memref<3x32xf32, #tpu.memory_space<vmem>>, %arg15: memref<3x32xf32, #tpu.memory_space<vmem>>, %arg16: memref<32x64xbf16, #tpu.memory_space<vmem>>, %arg17: memref<1x64xf32, #tpu.memory_space<vmem>>, %arg18: memref<64x32xbf16, #tpu.memory_space<vmem>>, %arg19: memref<1x32xf32, #tpu.memory_space<vmem>>, %arg20: memref<64x32xf32, #tpu.memory_space<vmem>>) attributes {dimension_semantics = [#tpu.dimension_semantics<parallel>], iteration_bounds = array<i64: 1>, scalar_prefetch = 0 : i64, scratch_operands = 0 : i64, tpu.core_type = #tpu.core_type<tc>, window_params = [{transform_indices = @transform_0, window_bounds = array<i64: 64, 32>}, {pipeline_mode = #tpu.pipeline_mode<synchronous>, transform_indices = @transform_1, window_bounds = array<i64: 64, 256>}, {pipeline_mode = #tpu.pipeline_mode<synchronous>, transform_indices = @transform_2, window_bounds = array<i64: 64, 256>}, {pipeline_mode = #tpu.pipeline_mode<synchronous>, transform_indices = @transform_3, window_bounds = array<i64: 32, 256>}, {pipeline_mode = #tpu.pipeline_mode<synchronous>, transform_indices = @transform_4, window_bounds = array<i64: 256, 32>}, {pipeline_mode = #tpu.pipeline_mode<synchronous>, transform_indices = @transform_5, window_bounds = array<i64: 32, 96>}, {pipeline_mode = #tpu.pipeline_mode<synchronous>, transform_indices = @transform_6, window_bounds = array<i64: 1, 96>}, {pipeline_mode = #tpu.pipeline_mode<synchronous>, transform_indices = @transform_7, window_bounds = array<i64: 32, 32>}, {pipeline_mode = #tpu.pipeline_mode<synchronous>, transform_indices = @transform_8, window_bounds = array<i64: 1, 32>}, {pipeline_mode = #tpu.pipeline_mode<synchronous>, transform_indices = @transform_9, window_bounds = array<i64: 32, 96>}, {pipeline_mode = #tpu.pipeline_mode<synchronous>, transform_indices = @transform_10, window_bounds = array<i64: 1, 96>}, {pipeline_mode = #tpu.pipeline_mode<synchronous>, transform_indices = @transform_11, window_bounds = array<i64: 32, 32>}, {pipeline_mode = #tpu.pipeline_mode<synchronous>, transform_indices = @transform_12, window_bounds = array<i64: 1, 32>}, {pipeline_mode = #tpu.pipeline_mode<synchronous>, transform_indices = @transform_13, window_bounds = array<i64: 3, 32>}, {pipeline_mode = #tpu.pipeline_mode<synchronous>, transform_indices = @transform_14, window_bounds = array<i64: 3, 32>}, {pipeline_mode = #tpu.pipeline_mode<synchronous>, transform_indices = @transform_15, window_bounds = array<i64: 32, 64>}, {pipeline_mode = #tpu.pipeline_mode<synchronous>, transform_indices = @transform_16, window_bounds = array<i64: 1, 64>}, {pipeline_mode = #tpu.pipeline_mode<synchronous>, transform_indices = @transform_17, window_bounds = array<i64: 64, 32>}, {pipeline_mode = #tpu.pipeline_mode<synchronous>, transform_indices = @transform_18, window_bounds = array<i64: 1, 32>}, {transform_indices = @transform_19, window_bounds = array<i64: 64, 32>}]} {
    %c0 = arith.constant 0 : index
    %c0_0 = arith.constant 0 : index
    %0 = vector.load %arg1[%c0, %c0_0] : memref<64x32xf32, #tpu.memory_space<vmem>>, vector<64x32xf32>
    %c0_1 = arith.constant 0 : index
    %c0_2 = arith.constant 0 : index
    %1 = vector.load %arg4[%c0_1, %c0_2] : memref<32x256xbf16, #tpu.memory_space<vmem>>, vector<32x256xbf16>
    %c0_3 = arith.constant 0 : index
    %c0_4 = arith.constant 0 : index
    %2 = vector.load %arg5[%c0_3, %c0_4] : memref<256x32xbf16, #tpu.memory_space<vmem>>, vector<256x32xbf16>
    %c0_5 = arith.constant 0 : index
    %c0_6 = arith.constant 0 : index
    %3 = vector.load %arg14[%c0_5, %c0_6] : memref<3x32xf32, #tpu.memory_space<vmem>>, vector<1x32xf32>
    %4 = vector.shape_cast %3 : vector<1x32xf32> to vector<32xf32>
    %c0_7 = arith.constant 0 : index
    %c0_8 = arith.constant 0 : index
    %5 = vector.load %arg15[%c0_7, %c0_8] : memref<3x32xf32, #tpu.memory_space<vmem>>, vector<1x32xf32>
    %6 = vector.shape_cast %5 : vector<1x32xf32> to vector<32xf32>
    %cst = arith.constant dense<0.000000e+00> : vector<64xf32>
    %7 = vector.multi_reduction <add>, %0, %cst [1] : vector<64x32xf32> to vector<64xf32>
    %8 = vector.shape_cast %7 : vector<64xf32> to vector<64x1xf32>
    %cst_9 = arith.constant 3.200000e+01 : f32
    %9 = vector.broadcast %cst_9 : f32 to vector<64x1xf32>
    %10 = arith.divf %8, %9 : vector<64x1xf32>
    %11 = vector.broadcast %10 : vector<64x1xf32> to vector<64x32xf32>
    %12 = arith.subf %0, %11 : vector<64x32xf32>
    %13 = arith.mulf %12, %12 : vector<64x32xf32>
    %cst_10 = arith.constant dense<0.000000e+00> : vector<64xf32>
    %14 = vector.multi_reduction <add>, %13, %cst_10 [1] : vector<64x32xf32> to vector<64xf32>
    %15 = vector.shape_cast %14 : vector<64xf32> to vector<64x1xf32>
    %cst_11 = arith.constant 3.200000e+01 : f32
    %16 = vector.broadcast %cst_11 : f32 to vector<64x1xf32>
    %17 = arith.divf %15, %16 : vector<64x1xf32>
    %18 = vector.broadcast %10 : vector<64x1xf32> to vector<64x32xf32>
    %19 = arith.subf %0, %18 : vector<64x32xf32>
    %cst_12 = arith.constant 9.99999996E-13 : f32
    %20 = vector.broadcast %cst_12 : f32 to vector<64x1xf32>
    %21 = arith.addf %17, %20 : vector<64x1xf32>
    %22 = math.rsqrt %21 : vector<64x1xf32>
    %23 = vector.broadcast %22 : vector<64x1xf32> to vector<64x32xf32>
    %24 = arith.mulf %19, %23 : vector<64x32xf32>
    %25 = vector.shape_cast %4 : vector<32xf32> to vector<1x32xf32>
    %26 = vector.broadcast %25 : vector<1x32xf32> to vector<64x32xf32>
    %27 = arith.mulf %24, %26 : vector<64x32xf32>
    %28 = vector.shape_cast %6 : vector<32xf32> to vector<1x32xf32>
    %29 = vector.broadcast %28 : vector<1x32xf32> to vector<64x32xf32>
    %30 = arith.addf %27, %29 : vector<64x32xf32>
    %31 = arith.truncf %30 : vector<64x32xf32> to vector<64x32xbf16>
    %c0_13 = arith.constant 0 : index
    %c0_14 = arith.constant 0 : index
    %32 = vector.load %arg6[%c0_13, %c0_14] : memref<32x96xbf16, #tpu.memory_space<vmem>>, vector<32x96xbf16>
    %cst_15 = arith.constant dense<0.000000e+00> : vector<64x96xf32>
    %33 = tpu.matmul %31, %32, %cst_15 {dimension_numbers = #tpu.dot_dimension_numbers<[1], [0], [0], [1], [0, 0, 1, 1], [], []>} : vector<64x32xbf16>, vector<32x96xbf16>, vector<64x96xf32> -> vector<64x96xf32>
    %c0_16 = arith.constant 0 : index
    %c0_17 = arith.constant 0 : index
    %34 = vector.load %arg7[%c0_16, %c0_17] : memref<1x96xf32, #tpu.memory_space<vmem>>, vector<1x96xf32>
    %35 = vector.broadcast %34 : vector<1x96xf32> to vector<64x96xf32>
    %36 = arith.addf %33, %35 : vector<64x96xf32>
    %37 = vector.extract_strided_slice %36 {offsets = [0, 0], sizes = [64, 32], strides = [1, 1]} : vector<64x96xf32> to vector<64x32xf32>
    %38 = arith.truncf %37 : vector<64x32xf32> to vector<64x32xbf16>
    %39 = vector.extract_strided_slice %36 {offsets = [0, 32], sizes = [64, 32], strides = [1, 1]} : vector<64x96xf32> to vector<64x32xf32>
    %40 = vector.extract_strided_slice %36 {offsets = [0, 64], sizes = [64, 32], strides = [1, 1]} : vector<64x96xf32> to vector<64x32xf32>
    %41 = arith.truncf %40 : vector<64x32xf32> to vector<64x32xbf16>
    %42 = tpu.transpose %39, [1, 0] : vector<64x32xf32> -> vector<32x64xf32>
    %43 = arith.truncf %42 : vector<32x64xf32> to vector<32x64xbf16>
    %44 = tpu.concatenate %43, %43, %43, %43 in 1 : vector<32x64xbf16>, vector<32x64xbf16>, vector<32x64xbf16>, vector<32x64xbf16> -> vector<32x256xbf16>
    %45 = arith.mulf %44, %1 : vector<32x256xbf16>
    %cst_18 = arith.constant dense<0.000000e+00> : vector<64x256xf32>
    %46 = tpu.matmul %38, %45, %cst_18 {dimension_numbers = #tpu.dot_dimension_numbers<[1], [0], [0], [1], [0, 0, 1, 1], [], []>} : vector<64x32xbf16>, vector<32x256xbf16>, vector<64x256xf32> -> vector<64x256xf32>
    %c0_19 = arith.constant 0 : index
    %c0_20 = arith.constant 0 : index
    %47 = vector.load %arg2[%c0_19, %c0_20] : memref<64x256xf32, #tpu.memory_space<vmem>>, vector<64x256xf32>
    %48 = arith.addf %46, %47 : vector<64x256xf32>
    %cst_21 = arith.constant dense<0xFF800000> : vector<64xf32>
    %49 = vector.multi_reduction <maximumf>, %48, %cst_21 [1] : vector<64x256xf32> to vector<64xf32>
    %50 = vector.shape_cast %49 : vector<64xf32> to vector<64x1xf32>
    %51 = vector.broadcast %50 : vector<64x1xf32> to vector<64x256xf32>
    %52 = arith.subf %48, %51 : vector<64x256xf32>
    %53 = math.exp %52 : vector<64x256xf32>
    %54 = arith.truncf %53 : vector<64x256xf32> to vector<64x256xbf16>
    %55 = tpu.concatenate %41, %41, %41, %41 in 0 : vector<64x32xbf16>, vector<64x32xbf16>, vector<64x32xbf16>, vector<64x32xbf16> -> vector<256x32xbf16>
    %56 = arith.mulf %55, %2 : vector<256x32xbf16>
    %57 = tpu.concatenate %56, %2 in 1 : vector<256x32xbf16>, vector<256x32xbf16> -> vector<256x64xbf16>
    %cst_22 = arith.constant dense<0.000000e+00> : vector<64x64xf32>
    %58 = tpu.matmul %54, %57, %cst_22 {dimension_numbers = #tpu.dot_dimension_numbers<[1], [0], [0], [1], [0, 0, 1, 1], [], []>} : vector<64x256xbf16>, vector<256x64xbf16>, vector<64x64xf32> -> vector<64x64xf32>
    %59 = vector.extract_strided_slice %58 {offsets = [0, 0], sizes = [64, 32], strides = [1, 1]} : vector<64x64xf32> to vector<64x32xf32>
    %60 = vector.extract_strided_slice %58 {offsets = [0, 32], sizes = [64, 32], strides = [1, 1]} : vector<64x64xf32> to vector<64x32xf32>
    %61 = tpu.reciprocal %60 {approx = true} : vector<64x32xf32> -> vector<64x32xf32>
    %62 = arith.mulf %59, %61 : vector<64x32xf32>
    %63 = arith.truncf %62 : vector<64x32xf32> to vector<64x32xbf16>
    %c0_23 = arith.constant 0 : index
    %c0_24 = arith.constant 0 : index
    %64 = vector.load %arg8[%c0_23, %c0_24] : memref<32x32xbf16, #tpu.memory_space<vmem>>, vector<32x32xbf16>
    %cst_25 = arith.constant dense<0.000000e+00> : vector<64x32xf32>
    %65 = tpu.matmul %63, %64, %cst_25 {dimension_numbers = #tpu.dot_dimension_numbers<[1], [0], [0], [1], [0, 0, 1, 1], [], []>} : vector<64x32xbf16>, vector<32x32xbf16>, vector<64x32xf32> -> vector<64x32xf32>
    %c0_26 = arith.constant 0 : index
    %c0_27 = arith.constant 0 : index
    %66 = vector.load %arg9[%c0_26, %c0_27] : memref<1x32xf32, #tpu.memory_space<vmem>>, vector<1x32xf32>
    %67 = vector.broadcast %66 : vector<1x32xf32> to vector<64x32xf32>
    %68 = arith.addf %65, %67 : vector<64x32xf32>
    %69 = arith.addf %0, %68 : vector<64x32xf32>
    %c1 = arith.constant 1 : index
    %c0_28 = arith.constant 0 : index
    %70 = vector.load %arg14[%c1, %c0_28] : memref<3x32xf32, #tpu.memory_space<vmem>>, vector<1x32xf32>
    %71 = vector.shape_cast %70 : vector<1x32xf32> to vector<32xf32>
    %c1_29 = arith.constant 1 : index
    %c0_30 = arith.constant 0 : index
    %72 = vector.load %arg15[%c1_29, %c0_30] : memref<3x32xf32, #tpu.memory_space<vmem>>, vector<1x32xf32>
    %73 = vector.shape_cast %72 : vector<1x32xf32> to vector<32xf32>
    %cst_31 = arith.constant dense<0.000000e+00> : vector<64xf32>
    %74 = vector.multi_reduction <add>, %69, %cst_31 [1] : vector<64x32xf32> to vector<64xf32>
    %75 = vector.shape_cast %74 : vector<64xf32> to vector<64x1xf32>
    %cst_32 = arith.constant 3.200000e+01 : f32
    %76 = vector.broadcast %cst_32 : f32 to vector<64x1xf32>
    %77 = arith.divf %75, %76 : vector<64x1xf32>
    %78 = vector.broadcast %77 : vector<64x1xf32> to vector<64x32xf32>
    %79 = arith.subf %69, %78 : vector<64x32xf32>
    %80 = arith.mulf %79, %79 : vector<64x32xf32>
    %cst_33 = arith.constant dense<0.000000e+00> : vector<64xf32>
    %81 = vector.multi_reduction <add>, %80, %cst_33 [1] : vector<64x32xf32> to vector<64xf32>
    %82 = vector.shape_cast %81 : vector<64xf32> to vector<64x1xf32>
    %cst_34 = arith.constant 3.200000e+01 : f32
    %83 = vector.broadcast %cst_34 : f32 to vector<64x1xf32>
    %84 = arith.divf %82, %83 : vector<64x1xf32>
    %85 = vector.broadcast %77 : vector<64x1xf32> to vector<64x32xf32>
    %86 = arith.subf %69, %85 : vector<64x32xf32>
    %cst_35 = arith.constant 9.99999996E-13 : f32
    %87 = vector.broadcast %cst_35 : f32 to vector<64x1xf32>
    %88 = arith.addf %84, %87 : vector<64x1xf32>
    %89 = math.rsqrt %88 : vector<64x1xf32>
    %90 = vector.broadcast %89 : vector<64x1xf32> to vector<64x32xf32>
    %91 = arith.mulf %86, %90 : vector<64x32xf32>
    %92 = vector.shape_cast %71 : vector<32xf32> to vector<1x32xf32>
    %93 = vector.broadcast %92 : vector<1x32xf32> to vector<64x32xf32>
    %94 = arith.mulf %91, %93 : vector<64x32xf32>
    %95 = vector.shape_cast %73 : vector<32xf32> to vector<1x32xf32>
    %96 = vector.broadcast %95 : vector<1x32xf32> to vector<64x32xf32>
    %97 = arith.addf %94, %96 : vector<64x32xf32>
    %98 = arith.truncf %97 : vector<64x32xf32> to vector<64x32xbf16>
    %c0_36 = arith.constant 0 : index
    %c0_37 = arith.constant 0 : index
    %99 = vector.load %arg10[%c0_36, %c0_37] : memref<32x96xbf16, #tpu.memory_space<vmem>>, vector<32x96xbf16>
    %cst_38 = arith.constant dense<0.000000e+00> : vector<64x96xf32>
    %100 = tpu.matmul %98, %99, %cst_38 {dimension_numbers = #tpu.dot_dimension_numbers<[1], [0], [0], [1], [0, 0, 1, 1], [], []>} : vector<64x32xbf16>, vector<32x96xbf16>, vector<64x96xf32> -> vector<64x96xf32>
    %c0_39 = arith.constant 0 : index
    %c0_40 = arith.constant 0 : index
    %101 = vector.load %arg11[%c0_39, %c0_40] : memref<1x96xf32, #tpu.memory_space<vmem>>, vector<1x96xf32>
    %102 = vector.broadcast %101 : vector<1x96xf32> to vector<64x96xf32>
    %103 = arith.addf %100, %102 : vector<64x96xf32>
    %104 = vector.extract_strided_slice %103 {offsets = [0, 0], sizes = [64, 32], strides = [1, 1]} : vector<64x96xf32> to vector<64x32xf32>
    %105 = arith.truncf %104 : vector<64x32xf32> to vector<64x32xbf16>
    %106 = vector.extract_strided_slice %103 {offsets = [0, 32], sizes = [64, 32], strides = [1, 1]} : vector<64x96xf32> to vector<64x32xf32>
    %107 = vector.extract_strided_slice %103 {offsets = [0, 64], sizes = [64, 32], strides = [1, 1]} : vector<64x96xf32> to vector<64x32xf32>
    %108 = arith.truncf %107 : vector<64x32xf32> to vector<64x32xbf16>
    %109 = tpu.transpose %106, [1, 0] : vector<64x32xf32> -> vector<32x64xf32>
    %110 = arith.truncf %109 : vector<32x64xf32> to vector<32x64xbf16>
    %111 = tpu.concatenate %110, %110, %110, %110 in 1 : vector<32x64xbf16>, vector<32x64xbf16>, vector<32x64xbf16>, vector<32x64xbf16> -> vector<32x256xbf16>
    %112 = arith.mulf %111, %1 : vector<32x256xbf16>
    %cst_41 = arith.constant dense<0.000000e+00> : vector<64x256xf32>
    %113 = tpu.matmul %105, %112, %cst_41 {dimension_numbers = #tpu.dot_dimension_numbers<[1], [0], [0], [1], [0, 0, 1, 1], [], []>} : vector<64x32xbf16>, vector<32x256xbf16>, vector<64x256xf32> -> vector<64x256xf32>
    %c0_42 = arith.constant 0 : index
    %c0_43 = arith.constant 0 : index
    %114 = vector.load %arg3[%c0_42, %c0_43] : memref<64x256xf32, #tpu.memory_space<vmem>>, vector<64x256xf32>
    %115 = arith.addf %113, %114 : vector<64x256xf32>
    %cst_44 = arith.constant dense<0xFF800000> : vector<64xf32>
    %116 = vector.multi_reduction <maximumf>, %115, %cst_44 [1] : vector<64x256xf32> to vector<64xf32>
    %117 = vector.shape_cast %116 : vector<64xf32> to vector<64x1xf32>
    %118 = vector.broadcast %117 : vector<64x1xf32> to vector<64x256xf32>
    %119 = arith.subf %115, %118 : vector<64x256xf32>
    %120 = math.exp %119 : vector<64x256xf32>
    %121 = arith.truncf %120 : vector<64x256xf32> to vector<64x256xbf16>
    %122 = tpu.concatenate %108, %108, %108, %108 in 0 : vector<64x32xbf16>, vector<64x32xbf16>, vector<64x32xbf16>, vector<64x32xbf16> -> vector<256x32xbf16>
    %123 = arith.mulf %122, %2 : vector<256x32xbf16>
    %124 = tpu.concatenate %123, %2 in 1 : vector<256x32xbf16>, vector<256x32xbf16> -> vector<256x64xbf16>
    %cst_45 = arith.constant dense<0.000000e+00> : vector<64x64xf32>
    %125 = tpu.matmul %121, %124, %cst_45 {dimension_numbers = #tpu.dot_dimension_numbers<[1], [0], [0], [1], [0, 0, 1, 1], [], []>} : vector<64x256xbf16>, vector<256x64xbf16>, vector<64x64xf32> -> vector<64x64xf32>
    %126 = vector.extract_strided_slice %125 {offsets = [0, 0], sizes = [64, 32], strides = [1, 1]} : vector<64x64xf32> to vector<64x32xf32>
    %127 = vector.extract_strided_slice %125 {offsets = [0, 32], sizes = [64, 32], strides = [1, 1]} : vector<64x64xf32> to vector<64x32xf32>
    %128 = tpu.reciprocal %127 {approx = true} : vector<64x32xf32> -> vector<64x32xf32>
    %129 = arith.mulf %126, %128 : vector<64x32xf32>
    %130 = arith.truncf %129 : vector<64x32xf32> to vector<64x32xbf16>
    %c0_46 = arith.constant 0 : index
    %c0_47 = arith.constant 0 : index
    %131 = vector.load %arg12[%c0_46, %c0_47] : memref<32x32xbf16, #tpu.memory_space<vmem>>, vector<32x32xbf16>
    %cst_48 = arith.constant dense<0.000000e+00> : vector<64x32xf32>
    %132 = tpu.matmul %130, %131, %cst_48 {dimension_numbers = #tpu.dot_dimension_numbers<[1], [0], [0], [1], [0, 0, 1, 1], [], []>} : vector<64x32xbf16>, vector<32x32xbf16>, vector<64x32xf32> -> vector<64x32xf32>
    %c0_49 = arith.constant 0 : index
    %c0_50 = arith.constant 0 : index
    %133 = vector.load %arg13[%c0_49, %c0_50] : memref<1x32xf32, #tpu.memory_space<vmem>>, vector<1x32xf32>
    %134 = vector.broadcast %133 : vector<1x32xf32> to vector<64x32xf32>
    %135 = arith.addf %132, %134 : vector<64x32xf32>
    %136 = arith.addf %69, %135 : vector<64x32xf32>
    %c2 = arith.constant 2 : index
    %c0_51 = arith.constant 0 : index
    %137 = vector.load %arg14[%c2, %c0_51] : memref<3x32xf32, #tpu.memory_space<vmem>>, vector<1x32xf32>
    %138 = vector.shape_cast %137 : vector<1x32xf32> to vector<32xf32>
    %c2_52 = arith.constant 2 : index
    %c0_53 = arith.constant 0 : index
    %139 = vector.load %arg15[%c2_52, %c0_53] : memref<3x32xf32, #tpu.memory_space<vmem>>, vector<1x32xf32>
    %140 = vector.shape_cast %139 : vector<1x32xf32> to vector<32xf32>
    %cst_54 = arith.constant dense<0.000000e+00> : vector<64xf32>
    %141 = vector.multi_reduction <add>, %136, %cst_54 [1] : vector<64x32xf32> to vector<64xf32>
    %142 = vector.shape_cast %141 : vector<64xf32> to vector<64x1xf32>
    %cst_55 = arith.constant 3.200000e+01 : f32
    %143 = vector.broadcast %cst_55 : f32 to vector<64x1xf32>
    %144 = arith.divf %142, %143 : vector<64x1xf32>
    %145 = vector.broadcast %144 : vector<64x1xf32> to vector<64x32xf32>
    %146 = arith.subf %136, %145 : vector<64x32xf32>
    %147 = arith.mulf %146, %146 : vector<64x32xf32>
    %cst_56 = arith.constant dense<0.000000e+00> : vector<64xf32>
    %148 = vector.multi_reduction <add>, %147, %cst_56 [1] : vector<64x32xf32> to vector<64xf32>
    %149 = vector.shape_cast %148 : vector<64xf32> to vector<64x1xf32>
    %cst_57 = arith.constant 3.200000e+01 : f32
    %150 = vector.broadcast %cst_57 : f32 to vector<64x1xf32>
    %151 = arith.divf %149, %150 : vector<64x1xf32>
    %152 = vector.broadcast %144 : vector<64x1xf32> to vector<64x32xf32>
    %153 = arith.subf %136, %152 : vector<64x32xf32>
    %cst_58 = arith.constant 9.99999996E-13 : f32
    %154 = vector.broadcast %cst_58 : f32 to vector<64x1xf32>
    %155 = arith.addf %151, %154 : vector<64x1xf32>
    %156 = math.rsqrt %155 : vector<64x1xf32>
    %157 = vector.broadcast %156 : vector<64x1xf32> to vector<64x32xf32>
    %158 = arith.mulf %153, %157 : vector<64x32xf32>
    %159 = vector.shape_cast %138 : vector<32xf32> to vector<1x32xf32>
    %160 = vector.broadcast %159 : vector<1x32xf32> to vector<64x32xf32>
    %161 = arith.mulf %158, %160 : vector<64x32xf32>
    %162 = vector.shape_cast %140 : vector<32xf32> to vector<1x32xf32>
    %163 = vector.broadcast %162 : vector<1x32xf32> to vector<64x32xf32>
    %164 = arith.addf %161, %163 : vector<64x32xf32>
    %165 = arith.truncf %164 : vector<64x32xf32> to vector<64x32xbf16>
    %c0_59 = arith.constant 0 : index
    %c0_60 = arith.constant 0 : index
    %166 = vector.load %arg16[%c0_59, %c0_60] : memref<32x64xbf16, #tpu.memory_space<vmem>>, vector<32x64xbf16>
    %cst_61 = arith.constant dense<0.000000e+00> : vector<64x64xf32>
    %167 = tpu.matmul %165, %166, %cst_61 {dimension_numbers = #tpu.dot_dimension_numbers<[1], [0], [0], [1], [0, 0, 1, 1], [], []>} : vector<64x32xbf16>, vector<32x64xbf16>, vector<64x64xf32> -> vector<64x64xf32>
    %c0_62 = arith.constant 0 : index
    %c0_63 = arith.constant 0 : index
    %168 = vector.load %arg17[%c0_62, %c0_63] : memref<1x64xf32, #tpu.memory_space<vmem>>, vector<1x64xf32>
    %169 = vector.broadcast %168 : vector<1x64xf32> to vector<64x64xf32>
    %170 = arith.addf %167, %169 : vector<64x64xf32>
    %cst_64 = arith.constant 5.000000e-01 : f32
    %171 = vector.broadcast %cst_64 : f32 to vector<64x64xf32>
    %172 = arith.mulf %171, %170 : vector<64x64xf32>
    %cst_65 = arith.constant 0.707106769 : f32
    %173 = vector.broadcast %cst_65 : f32 to vector<64x64xf32>
    %174 = arith.mulf %170, %173 : vector<64x64xf32>
    %175 = math.erf %174 : vector<64x64xf32>
    %cst_66 = arith.constant 1.000000e+00 : f32
    %176 = vector.broadcast %cst_66 : f32 to vector<64x64xf32>
    %177 = arith.addf %176, %175 : vector<64x64xf32>
    %178 = arith.mulf %172, %177 : vector<64x64xf32>
    %179 = arith.truncf %178 : vector<64x64xf32> to vector<64x64xbf16>
    %c0_67 = arith.constant 0 : index
    %c0_68 = arith.constant 0 : index
    %180 = vector.load %arg18[%c0_67, %c0_68] : memref<64x32xbf16, #tpu.memory_space<vmem>>, vector<64x32xbf16>
    %cst_69 = arith.constant dense<0.000000e+00> : vector<64x32xf32>
    %181 = tpu.matmul %179, %180, %cst_69 {dimension_numbers = #tpu.dot_dimension_numbers<[1], [0], [0], [1], [0, 0, 1, 1], [], []>} : vector<64x64xbf16>, vector<64x32xbf16>, vector<64x32xf32> -> vector<64x32xf32>
    %182 = arith.addf %136, %181 : vector<64x32xf32>
    %c0_70 = arith.constant 0 : index
    %c0_71 = arith.constant 0 : index
    %183 = vector.load %arg19[%c0_70, %c0_71] : memref<1x32xf32, #tpu.memory_space<vmem>>, vector<1x32xf32>
    %184 = vector.broadcast %183 : vector<1x32xf32> to vector<64x32xf32>
    %185 = arith.addf %182, %184 : vector<64x32xf32>
    %c0_72 = arith.constant 0 : index
    %c0_73 = arith.constant 0 : index
    %186 = vector.load %arg20[%c0_72, %c0_73] : memref<64x32xf32, #tpu.memory_space<vmem>>, vector<64x32xf32>
    tpu.vector_store %arg20[%c0_72, %c0_73], %185 {strides = array<i32>} : memref<64x32xf32, #tpu.memory_space<vmem>>, vector<64x32xf32>,
    return
  }
  func.func @transform_0(%arg0: i32) -> (i32, i32) {
    %c0_i32 = arith.constant 0 : i32
    %c0_i32_0 = arith.constant 0 : i32
    return %arg0, %c0_i32 : i32, i32
  }
  func.func @transform_1(%arg0: i32) -> (i32, i32) {
    %c0_i32 = arith.constant 0 : i32
    %c0_i32_0 = arith.constant 0 : i32
    %c0_i32_1 = arith.constant 0 : i32
    return %c0_i32, %c0_i32_0 : i32, i32
  }
  func.func @transform_2(%arg0: i32) -> (i32, i32) {
    %c0_i32 = arith.constant 0 : i32
    %c0_i32_0 = arith.constant 0 : i32
    %c0_i32_1 = arith.constant 0 : i32
    return %c0_i32, %c0_i32_0 : i32, i32
  }
  func.func @transform_3(%arg0: i32) -> (i32, i32) {
    %c0_i32 = arith.constant 0 : i32
    %c0_i32_0 = arith.constant 0 : i32
    %c0_i32_1 = arith.constant 0 : i32
    return %c0_i32, %c0_i32_0 : i32, i32
  }
  func.func @transform_4(%arg0: i32) -> (i32, i32) {
    %c0_i32 = arith.constant 0 : i32
    %c0_i32_0 = arith.constant 0 : i32
    %c0_i32_1 = arith.constant 0 : i32
    return %c0_i32, %c0_i32_0 : i32, i32
  }
  func.func @transform_5(%arg0: i32) -> (i32, i32) {
    %c0_i32 = arith.constant 0 : i32
    %c0_i32_0 = arith.constant 0 : i32
    %c0_i32_1 = arith.constant 0 : i32
    return %c0_i32, %c0_i32_0 : i32, i32
  }
  func.func @transform_6(%arg0: i32) -> (i32, i32) {
    %c0_i32 = arith.constant 0 : i32
    %c0_i32_0 = arith.constant 0 : i32
    %c0_i32_1 = arith.constant 0 : i32
    return %c0_i32, %c0_i32_0 : i32, i32
  }
  func.func @transform_7(%arg0: i32) -> (i32, i32) {
    %c0_i32 = arith.constant 0 : i32
    %c0_i32_0 = arith.constant 0 : i32
    %c0_i32_1 = arith.constant 0 : i32
    return %c0_i32, %c0_i32_0 : i32, i32
  }
  func.func @transform_8(%arg0: i32) -> (i32, i32) {
    %c0_i32 = arith.constant 0 : i32
    %c0_i32_0 = arith.constant 0 : i32
    %c0_i32_1 = arith.constant 0 : i32
    return %c0_i32, %c0_i32_0 : i32, i32
  }
  func.func @transform_9(%arg0: i32) -> (i32, i32) {
    %c0_i32 = arith.constant 0 : i32
    %c0_i32_0 = arith.constant 0 : i32
    %c0_i32_1 = arith.constant 0 : i32
    return %c0_i32, %c0_i32_0 : i32, i32
  }
  func.func @transform_10(%arg0: i32) -> (i32, i32) {
    %c0_i32 = arith.constant 0 : i32
    %c0_i32_0 = arith.constant 0 : i32
    %c0_i32_1 = arith.constant 0 : i32
    return %c0_i32, %c0_i32_0 : i32, i32
  }
  func.func @transform_11(%arg0: i32) -> (i32, i32) {
    %c0_i32 = arith.constant 0 : i32
    %c0_i32_0 = arith.constant 0 : i32
    %c0_i32_1 = arith.constant 0 : i32
    return %c0_i32, %c0_i32_0 : i32, i32
  }
  func.func @transform_12(%arg0: i32) -> (i32, i32) {
    %c0_i32 = arith.constant 0 : i32
    %c0_i32_0 = arith.constant 0 : i32
    %c0_i32_1 = arith.constant 0 : i32
    return %c0_i32, %c0_i32_0 : i32, i32
  }
  func.func @transform_13(%arg0: i32) -> (i32, i32) {
    %c0_i32 = arith.constant 0 : i32
    %c0_i32_0 = arith.constant 0 : i32
    %c0_i32_1 = arith.constant 0 : i32
    return %c0_i32, %c0_i32_0 : i32, i32
  }
  func.func @transform_14(%arg0: i32) -> (i32, i32) {
    %c0_i32 = arith.constant 0 : i32
    %c0_i32_0 = arith.constant 0 : i32
    %c0_i32_1 = arith.constant 0 : i32
    return %c0_i32, %c0_i32_0 : i32, i32
  }
  func.func @transform_15(%arg0: i32) -> (i32, i32) {
    %c0_i32 = arith.constant 0 : i32
    %c0_i32_0 = arith.constant 0 : i32
    %c0_i32_1 = arith.constant 0 : i32
    return %c0_i32, %c0_i32_0 : i32, i32
  }
  func.func @transform_16(%arg0: i32) -> (i32, i32) {
    %c0_i32 = arith.constant 0 : i32
    %c0_i32_0 = arith.constant 0 : i32
    %c0_i32_1 = arith.constant 0 : i32
    return %c0_i32, %c0_i32_0 : i32, i32
  }
  func.func @transform_17(%arg0: i32) -> (i32, i32) {
    %c0_i32 = arith.constant 0 : i32
    %c0_i32_0 = arith.constant 0 : i32
    %c0_i32_1 = arith.constant 0 : i32
    return %c0_i32, %c0_i32_0 : i32, i32
  }
  func.func @transform_18(%arg0: i32) -> (i32, i32) {
    %c0_i32 = arith.constant 0 : i32
    %c0_i32_0 = arith.constant 0 : i32
    %c0_i32_1 = arith.constant 0 : i32
    return %c0_i32, %c0_i32_0 : i32, i32
  }
  func.func @transform_19(%arg0: i32) -> (i32, i32) {
    %c0_i32 = arith.constant 0 : i32
    %c0_i32_0 = arith.constant 0 : i32
    return %arg0, %c0_i32 : i32, i32
  }
}

</mosaic_0001>

<bundles_post_ra>
// kernel: encoder_mo_layer_forward.1
= control target key start
LH: loop header
LB: loop body
LE: loop exit
PB: predicated region body
PF: predicated region fallthrough
CT: control target
= control target key end

     0   :  { %vm109_vm0 = vcmask 261120   ;;  %s2893_s30 = smov 96   ;;  %s2896_s23 = smov 32   ;;  %vm419_vm1 = vcmask 523264   ;;  %s4075_s0 = inlined_call_operand.vmem [shape: f32[64,32], index: 0, kind: input, shape index: {}, may-alias: {0,19}]   ;;  %s4076_s5 = inlined_call_operand.vmem [shape: bf16[32,96], index: 5, kind: input, shape index: {}]   ;;  %s4077_s13 = inlined_call_operand.vmem [shape: f32[3,32], index: 13, kind: input, shape index: {}]   ;;  %s4078_s14 = inlined_call_operand.vmem [shape: f32[3,32], index: 14, kind: input, shape index: {}]   ;;  %s4079_s6 = inlined_call_operand.vmem [shape: f32[1,96], index: 6, kind: input, shape index: {}]   ;;  %s4080_s4 = inlined_call_operand.vmem [shape: bf16[256,32], index: 4, kind: input, shape index: {}]   ;;  %s4081_s3 = inlined_call_operand.vmem [shape: bf16[32,256], index: 3, kind: input, shape index: {}]   ;;  %s4082_s1 = inlined_call_operand.vmem [shape: f32[64,256], index: 1, kind: input, shape index: {}]   ;;  %s4083_s7 = inlined_call_operand.vmem [shape: bf16[32,32], index: 7, kind: input, shape index: {}]   ;;  %s4084_s8 = inlined_call_operand.vmem [shape: f32[1,32], index: 8, kind: input, shape index: {}]   ;;  %s4085_s9 = inlined_call_operand.vmem [shape: bf16[32,96], index: 9, kind: input, shape index: {}]   ;;  %s4086_s10 = inlined_call_operand.vmem [shape: f32[1,96], index: 10, kind: input, shape index: {}]   ;;  %s4087_s2 = inlined_call_operand.vmem [shape: f32[64,256], index: 2, kind: input, shape index: {}]   ;;  %s4088_s11 = inlined_call_operand.vmem [shape: bf16[32,32], index: 11, kind: input, shape index: {}]   ;;  %s4089_s12 = inlined_call_operand.vmem [shape: f32[1,32], index: 12, kind: input, shape index: {}]   ;;  %s4090_s15 = inlined_call_operand.vmem [shape: bf16[32,64], index: 15, kind: input, shape index: {}]   ;;  %s4091_s17 = inlined_call_operand.vmem [shape: bf16[64,32], index: 17, kind: input, shape index: {}]   ;;  %s4092_s16 = inlined_call_operand.vmem [shape: f32[1,64], index: 16, kind: input, shape index: {}]   ;;  %s4093_s18 = inlined_call_operand.vmem [shape: f32[1,32], index: 18, kind: input, shape index: {}]   ;;  %s4094_s19 = inlined_call_operand.vmem [shape: f32[64,32], index: 19, kind: output, shape index: {}, may-alias: {0,19}]  }
   0x1   :  { %4106 = sst [smem:[#allocation7_spill]] %s4075_s0 }
   0x2   :  { %4107 = sst [smem:[#allocation8_spill]] %s4076_s5  ;;  %s4110_s20 = sld [smem:[#allocation7_spill]] }
   0x3   :  { %4108 = sst [smem:[#allocation9_spill]] %s4077_s13  ;;  %s4111_s22 = sld [smem:[#allocation8_spill]] }
   0x4   :  { %4109 = sst [smem:[#allocation10_spill]] %s4078_s14  ;;  %s4112_s14 = sld [smem:[#allocation9_spill]] }
   0x5   :  { %s4113_s28 = sld [smem:[#allocation10_spill]]  ;;  %s2894_s5 = smov 64  }
   0x8   :  { %v63_v0 = vld [vmem:[%s4110_s20] sm:$0xff]  ;;  %v65_v1 = vld [vmem:[%s4110_s20 + $0x10] sm:$0xff]  ;;  %v64_v2 = vld [vmem:[%s4110_s20 + $0x8] sm:$0xff] }
   0x9   :  { %v110_v3 = vsel %vm109_vm0, %v63_v0, 0.0  ;;  %v116_v4 = vsel %vm109_vm0, %v65_v1, 0.0  ;;  %v66_v5 = vld [vmem:[%s4110_s20 + $0x18] sm:$0xff]  ;;  %v113_v6 = vsel %vm109_vm0, %v64_v2, 0.0  ;;  %v67_v8 = vld [vmem:[%s4110_s20 + $0x20] sm:$0xff]  ;;  %v68_v9 = vld [vmem:[%s4110_s20 + $0x28] sm:$0xff] }
   0xa   :  { %111 = vadd.xlane.f32.xlu0 %v110_v3  ;;  %117 = vadd.xlane.f32.xlu1 %v116_v4  ;;  %v119_v7 = vsel %vm109_vm0, %v66_v5, 0.0  ;;  %v122_v10 = vsel %vm109_vm0, %v67_v8, 0.0  ;;  %v125_v11 = vsel %vm109_vm0, %v68_v9, 0.0  ;;  %v69_v12 = vld [vmem:[%s4110_s20 + $0x30] sm:$0xff]  ;;  %v70_v13 = vld [vmem:[%s4110_s20 + $0x38] sm:$0xff]  ;;  %v2685_v56 = vld [vmem:[%s4111_s22] sm:$0xff]  }
   0xb   :  { %v128_v14 = vsel %vm109_vm0, %v69_v12, 0.0  ;;  %v131_v15 = vsel %vm109_vm0, %v70_v13, 0.0  ;;  %v2686_v57 = vld [vmem:[%s4111_s22 + $0x8] sm:$0xff]   ;;  %2604 = vmatprep.subr.bf16.mxu0 %v2685_v56 }
   0xc   :  { %2605 = vmatpush3.bf16.msra.mxu0 %v2685_v56 }
   0xd   :  { %2606 = vmatprep.subr.bf16.mxu0 %v2686_v57 }
   0xe   :  { %114 = vadd.xlane.f32.xlu0 %v113_v6  ;;  %120 = vadd.xlane.f32.xlu1 %v119_v7 }
  0x10   :  { %2607 = vmatpush3.bf16.msra.mxu0 %v2686_v57 }
  0x12   :  { %123 = vadd.xlane.f32.xlu0 %v122_v10  ;;  %126 = vadd.xlane.f32.xlu1 %v125_v11 }
  0x16   :  { %129 = vadd.xlane.f32.xlu0 %v128_v14  ;;  %132 = vadd.xlane.f32.xlu1 %v131_v15 }
  0x97   :  { %v112_v16 = vpop.xlane.xlu0 %111  ;;  %v118_v17 = vpop.xlane.xlu1 %117 }
  0x98   :  { %v135_v18 = vmul.f32 0.03125, %v112_v16  ;;  %v137_v19 = vmul.f32 0.03125, %v118_v17 }
  0x9a   :  { %v3029_v20 = vsub.f32 %v63_v0, %v135_v18  ;;  %v3031_v21 = vsub.f32 %v65_v1, %v137_v19  ;;  %v2408_v19 = vld [vmem:[%s4112_s14] ss:$0 sm:$0xff] }
  0x9b   :  { %v115_v22 = vpop.xlane.xlu0 %114  ;;  %v121_v23 = vpop.xlane.xlu1 %120 }
  0x9c   :  { %v136_v24 = vmul.f32 0.03125, %v115_v22  ;;  %v138_v25 = vmul.f32 0.03125, %v121_v23  ;;  %v151_v26 = vmul.f32 %v3029_v20, %v3029_v20  ;;  %v153_v27 = vmul.f32 %v3031_v21, %v3031_v21 }
  0x9e   :  { %v3037_v28 = vsub.f32 %v64_v2, %v136_v24  ;;  %v3039_v29 = vsub.f32 %v66_v5, %v138_v25  ;;  %v159_v30 = vsel %vm109_vm0, %v151_v26, 0.0  ;;  %v165_v33 = vsel %vm109_vm0, %v153_v27, 0.0  ;;  %v2409_v27 = vld [vmem:[%s4113_s28] ss:$0 sm:$0xff] }
  0x9f   :  { %160 = vadd.xlane.f32.xlu0 %v159_v30  ;;  %v124_v31 = vpop.xlane.xlu0 %123  ;;  %v127_v32 = vpop.xlane.xlu1 %126 }
  0xa0   :  { %v139_v34 = vmul.f32 0.03125, %v124_v31  ;;  %v140_v35 = vmul.f32 0.03125, %v127_v32  ;;  %v152_v36 = vmul.f32 %v3037_v28, %v3037_v28  ;;  %v154_v37 = vmul.f32 %v3039_v29, %v3039_v29 }
  0xa2   :  { %v3047_v38 = vsub.f32 %v67_v8, %v139_v34  ;;  %v3049_v39 = vsub.f32 %v68_v9, %v140_v35  ;;  %v162_v40 = vsel %vm109_vm0, %v152_v36, 0.0  ;;  %v168_v43 = vsel %vm109_vm0, %v154_v37, 0.0 }
  0xa3   :  { %166 = vadd.xlane.f32.xlu0 %v165_v33  ;;  %163 = vadd.xlane.f32.xlu1 %v162_v40  ;;  %v130_v41 = vpop.xlane.xlu0 %129  ;;  %v133_v42 = vpop.xlane.xlu1 %132 }
  0xa4   :  { %v141_v44 = vmul.f32 0.03125, %v130_v41  ;;  %v142_v45 = vmul.f32 0.03125, %v133_v42  ;;  %v155_v46 = vmul.f32 %v3047_v38, %v3047_v38  ;;  %v156_v47 = vmul.f32 %v3049_v39, %v3049_v39 }
  0xa6   :  { %v3057_v48 = vsub.f32 %v69_v12, %v141_v44  ;;  %v3059_v49 = vsub.f32 %v70_v13, %v142_v45  ;;  %v171_v50 = vsel %vm109_vm0, %v155_v46, 0.0  ;;  %v174_v51 = vsel %vm109_vm0, %v156_v47, 0.0 }
  0xa7   :  { %169 = vadd.xlane.f32.xlu1 %v168_v43  ;;  %172 = vadd.xlane.f32.xlu0 %v171_v50 }
  0xa8   :  { %v157_v52 = vmul.f32 %v3057_v48, %v3057_v48  ;;  %v158_v53 = vmul.f32 %v3059_v49, %v3059_v49 }
  0xaa   :  { %v177_v54 = vsel %vm109_vm0, %v157_v52, 0.0  ;;  %v180_v55 = vsel %vm109_vm0, %v158_v53, 0.0 }
  0xab   :  { %175 = vadd.xlane.f32.xlu1 %v174_v51  ;;  %178 = vadd.xlane.f32.xlu0 %v177_v54 }
  0xaf   :  { %181 = vadd.xlane.f32.xlu1 %v180_v55 }
 0x12c   :  { %v161_v58 = vpop.xlane.xlu0 %160 }
 0x12d   :  { %v183_v59 = vmul.f32 0.03125, %v161_v58 }
 0x12f   :  { %v191_v60 = vadd.f32 1e-12, %v183_v59 }
 0x130   :  { %v164_v61 = vpop.xlane.xlu1 %163  ;;  %v167_v62 = vpop.xlane.xlu0 %166 }
 0x131   :  { %2721 = vrsqrt.f32 %v191_v60  ;;  %v184_v63 = vmul.f32 0.03125, %v164_v61  ;;  %v185_v0 = vmul.f32 0.03125, %v167_v62 }
 0x133   :  { %v192_v1 = vadd.f32 1e-12, %v184_v63  ;;  %v193_v2 = vadd.f32 1e-12, %v185_v0 }
 0x134   :  { %v170_v3 = vpop.xlane.xlu1 %169  ;;  %v173_v4 = vpop.xlane.xlu0 %172 }
 0x135   :  { %2723 = vrsqrt.f32 %v192_v1  ;;  %v186_v5 = vmul.f32 0.03125, %v170_v3  ;;  %v187_v6 = vmul.f32 0.03125, %v173_v4 }
 0x136   :  { %2725 = vrsqrt.f32 %v193_v2 }
 0x137   :  { %v194_v7 = vadd.f32 1e-12, %v186_v5  ;;  %v195_v8 = vadd.f32 1e-12, %v187_v6 }
 0x138   :  { %v176_v9 = vpop.xlane.xlu1 %175  ;;  %v179_v10 = vpop.xlane.xlu0 %178 }
 0x139   :  { %2727 = vrsqrt.f32 %v194_v7  ;;  %v188_v11 = vmul.f32 0.03125, %v176_v9  ;;  %v189_v12 = vmul.f32 0.03125, %v179_v10 }
 0x13a   :  { %2729 = vrsqrt.f32 %v195_v8 }
 0x13b   :  { %v2722_v13 = vpop.eup %2721  ;;  %v196_v14 = vadd.f32 1e-12, %v188_v11  ;;  %v197_v15 = vadd.f32 1e-12, %v189_v12 }
 0x13c   :  { %v182_v16 = vpop.xlane.xlu1 %181  ;;  %v207_v17 = vmul.f32 %v2722_v13, %v3029_v20 }
 0x13d   :  { %2731 = vrsqrt.f32 %v196_v14  ;;  %v190_v18 = vmul.f32 0.03125, %v182_v16 }
 0x13e   :  { %2733 = vrsqrt.f32 %v197_v15  ;;  %v219_v26 = vmul.f32 %v2408_v19, %v207_v17 }
 0x13f   :  { %v2724_v22 = vpop.eup %2723  ;;  %v198_v23 = vadd.f32 1e-12, %v190_v18 }
 0x140   :  { %v2726_v24 = vpop.eup %2725  ;;  %v208_v25 = vmul.f32 %v2724_v22, %v3037_v28  ;;  %v231_v33 = vadd.f32 %v2409_v27, %v219_v26 }
 0x141   :  { %2735 = vrsqrt.f32 %v198_v23  ;;  %v209_v20 = vmul.f32 %v2726_v24, %v3031_v21  ;;  %v3115_v23 = vld [vmem:[%s4080_s4 + $0x70] sm:$0xff]  }
 0x142   :  { %v220_v30 = vmul.f32 %v2408_v19, %v208_v25 }
 0x143   :  { %v2728_v31 = vpop.eup %2727  ;;  %v221_v36 = vmul.f32 %v2408_v19, %v209_v20 }
 0x144   :  { %v2730_v32 = vpop.eup %2729  ;;  %v232_v34 = vadd.f32 %v2409_v27, %v220_v30  ;;  %v210_v35 = vmul.f32 %v2728_v31, %v3039_v29  ;;  %v2689_v30 = vld [vmem:[%s4080_s4] sm:$0xff]  }
 0x145   :  { %v211_v37 = vmul.f32 %v2730_v32, %v3047_v38  ;;  %v233_v43 = vadd.f32 %v2409_v27, %v221_v36  ;;  %v3142_v36 = vld [vmem:[%s4080_s4 + $0x8] sm:$0xff]  }
 0x146   :  { %v239_v40 = vpack.c.bf16 %v232_v34, %v231_v33  ;;  %v222_v28 = vmul.f32 %v2408_v19, %v210_v35  ;;  %v2692_v33 = vld [vmem:[%s4080_s4 + $0x50] sm:$0xff]   ;;  %v2688_v34 = vld [vmem:[%s4080_s4 + $0x40] sm:$0xff]   ;;  %v2690_v35 = vld [vmem:[%s4080_s4 + $0x48] sm:$0xff]  }
 0x147   :  { %v2732_v41 = vpop.eup %2731  ;;  %v223_v45 = vmul.f32 %v2408_v19, %v211_v37  ;;  %v3150_v37 = vld [vmem:[%s4080_s4 + $0x10] sm:$0xff]  }
 0x148   :  { %v2734_v42 = vpop.eup %2733  ;;  %2608 = vmatprep.mubr.msk.bf16.mxu0 %vm109_vm0, %v239_v40  ;;  %v234_v44 = vadd.f32 %v2409_v27, %v222_v28  ;;  %v212_v21 = vmul.f32 %v2732_v41, %v3049_v39  ;;  %v2694_v40 = vld [vmem:[%s4080_s4 + $0x58] sm:$0xff]   ;;  %v3168_v41 = vld [vmem:[%s4080_s4 + $0x60] sm:$0xff]  }
 0x149   :  { %v213_v46 = vmul.f32 %v2734_v42, %v3057_v48  ;;  %v235_v29 = vadd.f32 %v2409_v27, %v223_v45  ;;  %v2410_v48 = vld [vmem:[%s4079_s6] ss:$0 sm:$0xff]  ;;  %v3161_v28 = vld [vmem:[%s4080_s4 + $0x18] sm:$0xff]  }
 0x14a   :  { %v240_v47 = vpack.c.bf16 %v234_v44, %v233_v43  ;;  %v224_v50 = vmul.f32 %v2408_v19, %v212_v21  ;;  %v3175_v42 = vld [vmem:[%s4080_s4 + $0x20] sm:$0xff]   ;;  %v3182_v43 = vld [vmem:[%s4080_s4 + $0x68] sm:$0xff]   ;;  %v3196_v21 = vld [vmem:[%s4080_s4 + $0x30] sm:$0xff]  }
 0x14b   :  { %v2736_v51 = vpop.eup %2735  ;;  %v225_v53 = vmul.f32 %v2408_v19, %v213_v46  ;;  %v3189_v44 = vld [vmem:[%s4080_s4 + $0x28] sm:$0xff]   ;;  %v3203_v45 = vld [vmem:[%s4080_s4 + $0x78] sm:$0xff]  }
 0x14c   :  { %2609 = vmatmul.mubr.msk.bf16.vlgmr.msra.gmra.mrb[0].mxu0 %vm109_vm0, %v240_v47  ;;  %v236_v38 = vadd.f32 %v2409_v27, %v224_v50  ;;  %v214_v52 = vmul.f32 %v2736_v51, %v3059_v49  ;;  %v3210_v46 = vld [vmem:[%s4080_s4 + $0x38] sm:$0xff]   ;;  %v2703_v47 = vld [vmem:[%s4081_s3 + $0x4] ss:$8 sps:$4 sm:$0xff]   ;;  %v2705_v50 = vld [vmem:[%s4081_s3] ss:$8 sps:$4 sm:$0xff]  }
 0x14d   :  { %v237_v56 = vadd.f32 %v2409_v27, %v225_v53  ;;  %v2706_v53 = vld [vmem:[%s4081_s3 + $0x10] ss:$8 sps:$4 sm:$0xff]  }
 0x14e   :  { %v241_v54 = vpack.c.bf16 %v236_v38, %v235_v29  ;;  %v226_v55 = vmul.f32 %v2408_v19, %v214_v52 }
 0x150   :  { %2612 = vmatprep.mubr.msk.bf16.mxu0 %vm109_vm0, %v241_v54  ;;  %v238_v57 = vadd.f32 %v2409_v27, %v226_v55  ;;  %v4099_v27 = vmov 0   ;;  %v2708_v54 = vld [vmem:[%s4081_s3 + $0x14] ss:$8 sps:$4 sm:$0xff]  }
 0x151   :  { %512 = vmatprep.mubr.bf16.mxu1 %v4099_v27 }
 0x152   :  { %v242_v39 = vpack.c.bf16 %v238_v57, %v237_v56 }
 0x154   :  { %2613 = vmatmul.mubr.msk.bf16.gmra.mrb[4].mxu0 %vm109_vm0, %v242_v39 }
 0x21f   :  { %v2610_v58 = vpop.f32.mrb[0].mxu0 }
 0x220   :  { %v321_v59 = vadd.f32 %v2610_v58, %v2410_v48  ;;  %v312_v60 = vpop.f32.mrb[1].mxu0 }
 0x221   :  { %v313_v61 = vadd.f32 %v2410_v48, %v312_v60  ;;  %v2611_v62 = vpop.f32.mrb[2].mxu0 }
 0x222   :  { %v324_v49 = vadd.f32 %v2611_v62, %v2410_v48  ;;  %359 = vrot.lane.b32.xlu1 %v321_v59, %s2893_s30  ;;  %v315_v63 = vpop.f32.mrb[3].mxu0 }
 0x223   :  { %v316_v0 = vadd.f32 %v2410_v48, %v315_v63  ;;  %355 = vrot.lane.b32.xlu0 %v313_v61, %s2893_s30 }
 0x224   :  { %v3098_v1 = vpack.c.bf16 %v324_v49, %v321_v59 }
 0x225   :  { %v3100_v2 = vpack.c.bf16 %v316_v0, %v313_v61 }
 0x226   :  { %357 = vrot.lane.b32.xlu1 %v316_v0, %s2893_s30 }
 0x227   :  { %v2614_v3 = vpop.f32.mrb[4].mxu0 }
 0x228   :  { %v328_v4 = vpop.f32.mrb[5].mxu0  ;;  %v337_v7 = vadd.f32 %v2614_v3, %v2410_v48 }
 0x229   :  { %v329_v5 = vadd.f32 %v2410_v48, %v328_v4  ;;  %v2615_v6 = vpop.f32.mrb[6].mxu0 }
 0x22a   :  { %v340_v8 = vadd.f32 %v2615_v6, %v2410_v48  ;;  %361 = vrot.lane.b32.xlu1 %v324_v49, %s2893_s30  ;;  %v331_v9 = vpop.f32.mrb[7].mxu0 }
 0x22b   :  { %v332_v10 = vadd.f32 %v2410_v48, %v331_v9  ;;  %363 = vrot.lane.b32.xlu0 %v329_v5, %s2893_s30 }
 0x22c   :  { %v3105_v11 = vpack.c.bf16 %v340_v8, %v337_v7 }
 0x22d   :  { %v3107_v12 = vpack.c.bf16 %v332_v10, %v329_v5 }
 0x22e   :  { %365 = vrot.lane.b32.xlu1 %v332_v10, %s2893_s30 }
 0x22f   :  { %367 = vrot.lane.b32.xlu0 %v337_v7, %s2893_s30 }
 0x232   :  { %369 = vrot.lane.b32.xlu1 %v340_v8, %s2893_s30 }
 0x294   :  { %v360_v13 = vpop.permute.xlu1 %359 }
 0x295   :  { %v356_v14 = vpop.permute.xlu0 %355 }
 0x296   :  { %379 = vxpose.xlu0.b32.start [1/8] (short) (narrow) %v356_v14, 32 }
 0x298   :  { %v358_v15 = vpop.permute.xlu1 %357 }
 0x29a   :  { %380 = vxpose.xlu0.b32.cont [2/8] (short) (narrow) %v358_v15, 32 }
 0x29c   :  { %v362_v16 = vpop.permute.xlu1 %361 }
 0x29d   :  { %v364_v17 = vpop.permute.xlu0 %363 }
 0x29e   :  { %381 = vxpose.xlu0.b32.cont [3/8] (short) (narrow) %v360_v13, 32 }
 0x2a0   :  { %v366_v18 = vpop.permute.xlu1 %365 }
 0x2a1   :  { %v368_v19 = vpop.permute.xlu0 %367 }
 0x2a2   :  { %382 = vxpose.xlu0.b32.cont [4/8] (short) (narrow) %v362_v16, 32 }
 0x2a4   :  { %v370_v22 = vpop.permute.xlu1 %369 }
 0x2a6   :  { %383 = vxpose.xlu0.b32.cont [5/8] (short) (narrow) %v364_v17, 32 }
 0x2aa   :  { %384 = vxpose.xlu0.b32.cont [6/8] (short) (narrow) %v366_v18, 32 }
 0x2ae   :  { %385 = vxpose.xlu0.b32.cont [7/8] (short) (narrow) %v368_v19, 32 }
 0x2b2   :  { %386 = vxpose.xlu0.b32.end [8/8] (short) (narrow) %v370_v22, 32 }
 0x2db   :  { %741 = vrot.lane.b32.xlu0 %v3115_v23, %s2894_s5 }
 0x2df   :  { %825 = vrot.lane.b32.xlu0 %v2689_v30, %s2896_s23 }
 0x2e3   :  { %845 = vrot.lane.b32.xlu0 %v2692_v33, %s2896_s23 }
 0x316   :  { %v395_v24 = vpop.trf.xlu0 }
 0x31a   :  { %v396_v25 = vpop.trf.xlu0 }
 0x31b   :  { %v411_v26 = vpack.c.bf16 %v396_v25, %v395_v24 }
 0x31d   :  { %415 = vrot.lane.b32.xlu1 %v411_v26, %s2894_s5 }
 0x31e   :  { %v397_v20 = vpop.trf.xlu0 }
 0x322   :  { %v398_v31 = vpop.trf.xlu0 }
 0x323   :  { %v412_v32 = vpack.c.bf16 %v398_v31, %v397_v20 }
 0x325   :  { %417 = vrot.lane.b32.xlu1 %v412_v32, %s2894_s5 }
 0x329   :  { %729 = vrot.lane.b32.xlu1 %v2688_v34, %s2894_s5 }
 0x32d   :  { %713 = vrot.lane.b32.xlu1 %v2689_v30, %s2894_s5 }
 0x331   :  { %731 = vrot.lane.b32.xlu1 %v2690_v35, %s2894_s5 }
 0x335   :  { %715 = vrot.lane.b32.xlu1 %v3142_v36, %s2894_s5 }
 0x339   :  { %733 = vrot.lane.b32.xlu1 %v2692_v33, %s2894_s5 }
 0x33d   :  { %717 = vrot.lane.b32.xlu1 %v3150_v37, %s2894_s5 }
 0x341   :  { %735 = vrot.lane.b32.xlu1 %v2694_v40, %s2894_s5 }
 0x345   :  { %719 = vrot.lane.b32.xlu1 %v3161_v28, %s2894_s5 }
 0x349   :  { %737 = vrot.lane.b32.xlu1 %v3168_v41, %s2894_s5 }
 0x34d   :  { %721 = vrot.lane.b32.xlu1 %v3175_v42, %s2894_s5  ;;  %v3322_v24 = vpop.permute.xlu0 %741 }
 0x351   :  { %739 = vrot.lane.b32.xlu1 %v3182_v43, %s2894_s5  ;;  %v3343_v31 = vpop.permute.xlu0 %825 }
 0x355   :  { %723 = vrot.lane.b32.xlu1 %v3189_v44, %s2894_s5 }
 0x359   :  { %725 = vrot.lane.b32.xlu1 %v3196_v21, %s2894_s5 }
 0x35d   :  { %743 = vrot.lane.b32.xlu1 %v3203_v45, %s2894_s5 }
 0x361   :  { %727 = vrot.lane.b32.xlu1 %v3210_v46, %s2894_s5 }
 0x38f   :  { %v416_v51 = vpop.permute.xlu1 %415 }
 0x390   :  { %v422_v29 = vsel %vm419_vm1, %v411_v26, %v416_v51 }
 0x391   :  { %v449_v38 = vmul.bf16 %v2703_v47, %v422_v29  ;;  %v448_v52 = vmul.bf16 %v2705_v50, %v422_v29 }
 0x393   :  { %480 = vmatprep.subr.bf16.mxu1 %v449_v38 }
 0x394   :  { %481 = vmatpush1.bf16.msra.mxu1 %v448_v52 }
 0x397   :  { %v418_v55 = vpop.permute.xlu1 %417 }
 0x398   :  { %v426_v56 = vsel %vm419_vm1, %v412_v32, %v418_v55 }
 0x399   :  { %v450_v57 = vmul.bf16 %v2706_v53, %v426_v56  ;;  %v451_v39 = vmul.bf16 %v2708_v54, %v426_v56 }
 0x39b   :  { %482 = vmatprep.subr.bf16.mxu1 %v451_v39  ;;  %v3228_v48 = vpop.permute.xlu1 %729 }
 0x39c   :  { %v769_v58 = vmul.bf16 %v3228_v48, %v3100_v2  ;;  %483 = vmatpush1.bf16.msra.mxu1 %v450_v57 }
 0x39e   :  { %809 = vrot.lane.b32.xlu1 %v769_v58, %s2894_s5 }
 0x39f   :  { %2421 = vmatmul.mubr.msk.bf16.vlgmr.msra.gmra.mrb[0].mxu1 %vm109_vm0, %v3100_v2  ;;  %v3235_v59 = vpop.permute.xlu1 %713 }
 0x3a0   :  { %522 = vmatprep.mubr.bf16.mxu1 %v4099_v27  ;;  %v761_v61 = vmul.bf16 %v3235_v59, %v3100_v2 }
 0x3a2   :  { %841 = vrot.lane.b32.xlu1 %v2688_v34, %s2896_s23 }
 0x3a3   :  { %v3239_v60 = vpop.permute.xlu1 %731 }
 0x3a4   :  { %v770_v49 = vmul.bf16 %v3239_v60, %v3098_v1 }
 0x3a6   :  { %793 = vrot.lane.b32.xlu1 %v761_v61, %s2894_s5 }
 0x3a7   :  { %2422 = vmatmul.mubr.msk.bf16.gmra.mrb[4].mxu1 %vm109_vm0, %v3098_v1  ;;  %v3246_v62 = vpop.permute.xlu1 %715 }
 0x3a8   :  { %532 = vmatprep.mubr.bf16.mxu1 %v4099_v27  ;;  %v762_v3 = vmul.bf16 %v3246_v62, %v3098_v1 }
 0x3aa   :  { %811 = vrot.lane.b32.xlu1 %v770_v49, %s2894_s5 }
 0x3ab   :  { %v3252_v63 = vpop.permute.xlu1 %733 }
 0x3ac   :  { %v771_v7 = vmul.bf16 %v3252_v63, %v3107_v12 }
 0x3ae   :  { %843 = vrot.lane.b32.xlu1 %v2690_v35, %s2896_s23  ;;  %v3347_v35 = vpop.permute.xlu0 %845 }
 0x3af   :  { %2423 = vmatmul.mubr.msk.bf16.gmra.mrb[8].mxu1 %vm109_vm0, %v3107_v12  ;;  %v3257_v0 = vpop.permute.xlu1 %717 }
 0x3b0   :  { %v763_v4 = vmul.bf16 %v3257_v0, %v3107_v12  ;;  %542 = vmatprep.mubr.bf16.mxu1 %v4099_v27 }
 0x3b2   :  { %795 = vrot.lane.b32.xlu1 %v762_v3, %s2894_s5  ;;  %797 = vrot.lane.b32.xlu0 %v763_v4, %s2894_s5 }
 0x3b3   :  { %v3266_v5 = vpop.permute.xlu1 %735 }
 0x3b4   :  { %v772_v10 = vmul.bf16 %v3266_v5, %v3105_v11 }
 0x3b6   :  { %827 = vrot.lane.b32.xlu1 %v3142_v36, %s2896_s23  ;;  %847 = vrot.lane.b32.xlu0 %v2694_v40, %s2896_s23 }
 0x3b7   :  { %2424 = vmatmul.mubr.msk.bf16.gmra.mrb[12].mxu1 %vm109_vm0, %v3105_v11  ;;  %v3273_v6 = vpop.permute.xlu1 %719 }
 0x3b8   :  { %v764_v15 = vmul.bf16 %v3273_v6, %v3105_v11 }
 0x3ba   :  { %813 = vrot.lane.b32.xlu1 %v771_v7, %s2894_s5  ;;  %831 = vrot.lane.b32.xlu0 %v3161_v28, %s2896_s23 }
 0x3bb   :  { %v3280_v8 = vpop.permute.xlu1 %737 }
 0x3bc   :  { %v773_v17 = vmul.bf16 %v3280_v8, %v3100_v2 }
 0x3be   :  { %829 = vrot.lane.b32.xlu1 %v3150_v37, %s2896_s23  ;;  %849 = vrot.lane.b32.xlu0 %v3168_v41, %s2896_s23 }
 0x3bf   :  { %v3286_v9 = vpop.permute.xlu1 %721 }
 0x3c0   :  { %v765_v13 = vmul.bf16 %v3286_v9, %v3100_v2 }
 0x3c2   :  { %815 = vrot.lane.b32.xlu1 %v772_v10, %s2894_s5  ;;  %801 = vrot.lane.b32.xlu0 %v765_v13, %s2894_s5 }
 0x3c3   :  { %v3294_v14 = vpop.permute.xlu1 %739 }
 0x3c4   :  { %v774_v19 = vmul.bf16 %v3294_v14, %v3098_v1 }
 0x3c6   :  { %799 = vrot.lane.b32.xlu1 %v764_v15, %s2894_s5  ;;  %851 = vrot.lane.b32.xlu0 %v3182_v43, %s2896_s23 }
 0x3c7   :  { %v3301_v16 = vpop.permute.xlu1 %723 }
 0x3c8   :  { %v766_v2 = vmul.bf16 %v3301_v16, %v3098_v1 }
 0x3ca   :  { %817 = vrot.lane.b32.xlu1 %v773_v17, %s2894_s5  ;;  %835 = vrot.lane.b32.xlu0 %v3189_v44, %s2896_s23 }
 0x3cb   :  { %v3308_v18 = vpop.permute.xlu1 %725 }
 0x3cc   :  { %v767_v22 = vmul.bf16 %v3308_v18, %v3107_v12 }
 0x3ce   :  { %833 = vrot.lane.b32.xlu1 %v3175_v42, %s2896_s23  ;;  %853 = vrot.lane.b32.xlu0 %v3115_v23, %s2896_s23  ;;  %v775_v23 = vmul.bf16 %v3322_v24, %v3107_v12 }
 0x3cf   :  { %v3330_v25 = vpop.permute.xlu1 %743 }
 0x3d0   :  { %v776_v1 = vmul.bf16 %v3330_v25, %v3105_v11 }
 0x3d2   :  { %819 = vrot.lane.b32.xlu1 %v774_v19, %s2894_s5  ;;  %805 = vrot.lane.b32.xlu0 %v767_v22, %s2894_s5 }
 0x3d3   :  { %v3337_v26 = vpop.permute.xlu1 %727 }
 0x3d6   :  { %803 = vrot.lane.b32.xlu1 %v766_v2, %s2894_s5  ;;  %855 = vrot.lane.b32.xlu0 %v3203_v45, %s2896_s23 }
 0x3da   :  { %821 = vrot.lane.b32.xlu1 %v775_v23, %s2894_s5 }
 0x3de   :  { %837 = vrot.lane.b32.xlu1 %v3196_v21, %s2896_s23 }
 0x3e2   :  { %823 = vrot.lane.b32.xlu1 %v776_v1, %s2894_s5 }
 0x410   :  { %v810_v20 = vpop.permute.xlu1 %809 }
 0x414   :  { %v3339_v30 = vpop.permute.xlu1 %841 }
 0x415   :  { %v891_v12 = vsel %vm109_vm0, %v810_v20, %v3339_v30  ;;  %v452_v20 = vld [vmem:[%s4082_s1] sm:$0xff] }
 0x416   :  { %2492 = vmatprep.subr.bf16.mxu0 %v891_v12  ;;  %v453_v12 = vld [vmem:[%s4082_s1 + $0x8] sm:$0xff] }
 0x418   :  { %v794_v32 = vpop.permute.xlu1 %793 }
 0x419   :  { %v859_v33 = vsel %vm109_vm0, %v794_v32, %v3343_v31 }
 0x41a   :  { %2493 = vmatpush3.bf16.msra.mxu0 %v859_v33  ;;  %v454_v33 = vld [vmem:[%s4082_s1 + $0x10] sm:$0xff] }
 0x41c   :  { %v812_v34 = vpop.permute.xlu1 %811 }
 0x420   :  { %v3349_v36 = vpop.permute.xlu1 %843 }
 0x421   :  { %v895_v37 = vsel %vm109_vm0, %v812_v34, %v3349_v36 }
 0x422   :  { %2494 = vmatprep.subr.bf16.mxu0 %v895_v37 }
 0x424   :  { %v796_v40 = vpop.permute.xlu1 %795  ;;  %v798_v28 = vpop.permute.xlu0 %797 }
 0x428   :  { %v3353_v41 = vpop.permute.xlu1 %827  ;;  %v3355_v42 = vpop.permute.xlu0 %847 }
 0x429   :  { %v863_v43 = vsel %vm109_vm0, %v796_v40, %v3353_v41  ;;  %v455_v40 = vld [vmem:[%s4082_s1 + $0x18] sm:$0xff] }
 0x42a   :  { %2495 = vmatpush3.bf16.msra.mxu0 %v863_v43 }
 0x42c   :  { %v814_v44 = vpop.permute.xlu1 %813  ;;  %v3359_v21 = vpop.permute.xlu0 %831 }
 0x42d   :  { %v899_v45 = vsel %vm109_vm0, %v814_v44, %v3347_v35 }
 0x42e   :  { %2496 = vmatprep.subr.bf16.mxu0 %v899_v45 }
 0x430   :  { %v3363_v47 = vpop.permute.xlu1 %829  ;;  %v3365_v50 = vpop.permute.xlu0 %849 }
 0x431   :  { %v867_v51 = vsel %vm109_vm0, %v798_v28, %v3363_v47 }
 0x432   :  { %2497 = vmatpush3.bf16.msra.mxu0 %v867_v51 }
 0x434   :  { %v816_v29 = vpop.permute.xlu1 %815  ;;  %v802_v52 = vpop.permute.xlu0 %801 }
 0x435   :  { %v903_v38 = vsel %vm109_vm0, %v816_v29, %v3355_v42 }
 0x436   :  { %2498 = vmatprep.subr.bf16.mxu0 %v903_v38  ;;  %v456_v38 = vld [vmem:[%s4082_s1 + $0x20] sm:$0xff] }
 0x438   :  { %v800_v53 = vpop.permute.xlu1 %799  ;;  %v3373_v55 = vpop.permute.xlu0 %851 }
 0x439   :  { %v871_v54 = vsel %vm109_vm0, %v800_v53, %v3359_v21  ;;  %v457_v53 = vld [vmem:[%s4082_s1 + $0x28] sm:$0xff] }
 0x43a   :  { %2499 = vmatpush3.bf16.msra.mxu0 %v871_v54 }
 0x43c   :  { %v818_v56 = vpop.permute.xlu1 %817  ;;  %v3381_v61 = vpop.permute.xlu0 %835 }
 0x43d   :  { %v907_v57 = vsel %vm109_vm0, %v818_v56, %v3365_v50  ;;  %v458_v56 = vld [vmem:[%s4082_s1 + $0x30] sm:$0xff] }
 0x43e   :  { %2500 = vmatprep.subr.bf16.mxu0 %v907_v57 }
 0x440   :  { %v3377_v39 = vpop.permute.xlu1 %833  ;;  %v3385_v4 = vpop.permute.xlu0 %853 }
 0x441   :  { %v875_v58 = vsel %vm109_vm0, %v802_v52, %v3377_v39 }
 0x442   :  { %2501 = vmatpush3.bf16.msra.mxu0 %v875_v58 }
 0x444   :  { %v820_v49 = vpop.permute.xlu1 %819  ;;  %v806_v17 = vpop.permute.xlu0 %805 }
 0x445   :  { %v911_v3 = vsel %vm109_vm0, %v820_v49, %v3373_v55  ;;  %v459_v49 = vld [vmem:[%s4082_s1 + $0x38] sm:$0xff] }
 0x446   :  { %2502 = vmatprep.subr.bf16.mxu0 %v911_v3 }
 0x448   :  { %v804_v7 = vpop.permute.xlu1 %803  ;;  %v3395_v2 = vpop.permute.xlu0 %855 }
 0x449   :  { %v879_v10 = vsel %vm109_vm0, %v804_v7, %v3381_v61 }
 0x44a   :  { %2503 = vmatpush3.bf16.msra.mxu0 %v879_v10 }
 0x44c   :  { %v822_v13 = vpop.permute.xlu1 %821 }
 0x44d   :  { %v915_v15 = vsel %vm109_vm0, %v822_v13, %v3385_v4 }
 0x44e   :  { %2504 = vmatprep.subr.bf16.mxu0 %v915_v15 }
 0x450   :  { %v3391_v19 = vpop.permute.xlu1 %837 }
 0x451   :  { %v883_v22 = vsel %vm109_vm0, %v806_v17, %v3391_v19 }
 0x452   :  { %2505 = vmatpush3.bf16.msra.mxu0 %v883_v22  ;;  %v460_v22 = vld [vmem:[%s4082_s1 + $0x40] sm:$0xff] }
 0x454   :  { %v824_v23 = vpop.permute.xlu1 %823 }
 0x455   :  { %v919_v1 = vsel %vm109_vm0, %v824_v23, %v3395_v2 }
 0x456   :  { %2506 = vmatprep.subr.bf16.mxu0 %v919_v1  ;;  %v461_v1 = vld [vmem:[%s4082_s1 + $0x48] sm:$0xff] }
 0x472   :  { %v514_v32 = vpop.f32.mrb[0].mxu1 }
 0x473   :  { %v3408_v34 = vadd.f32 %v514_v32, %v452_v20  ;;  %v516_v37 = vpop.f32.mrb[1].mxu1 }
 0x474   :  { %v3413_v28 = vadd.f32 %v516_v37, %v453_v12  ;;  %v518_v43 = vpop.f32.mrb[2].mxu1  ;;  %v462_v12 = vld [vmem:[%s4082_s1 + $0x50] sm:$0xff]  ;;  %v463_v37 = vld [vmem:[%s4082_s1 + $0x58] sm:$0xff] }
 0x475   :  { %v3415_v44 = vadd.f32 %v518_v43, %v454_v33  ;;  %v520_v45 = vpop.f32.mrb[3].mxu1 }
 0x476   :  { %v521_v51 = vadd.f32 %v520_v45, %v455_v40  ;;  %v553_v29 = vmax.f32 %v3408_v34, %v3413_v28 }
 0x478   :  { %554 = vmax.xlane.f32.xlu1 %v553_v29  ;;  %v556_v52 = vmax.f32 %v3415_v44, %v521_v51 }
 0x47a   :  { %v524_v54 = vpop.f32.mrb[4].mxu1  ;;  %557 = vmax.xlane.f32.xlu0 %v556_v52 }
 0x47b   :  { %v3429_v57 = vadd.f32 %v524_v54, %v456_v38  ;;  %v526_v58 = vpop.f32.mrb[5].mxu1 }
 0x47c   :  { %v3434_v3 = vadd.f32 %v526_v58, %v457_v53  ;;  %v528_v7 = vpop.f32.mrb[6].mxu1  ;;  %v464_v53 = vld [vmem:[%s4082_s1 + $0x60] sm:$0xff] }
 0x47d   :  { %v3436_v10 = vadd.f32 %v528_v7, %v458_v56  ;;  %v530_v13 = vpop.f32.mrb[7].mxu1  ;;  %v465_v56 = vld [vmem:[%s4082_s1 + $0x68] sm:$0xff] }
 0x47e   :  { %v559_v15 = vmax.f32 %v3429_v57, %v3434_v3  ;;  %v531_v17 = vadd.f32 %v530_v13, %v459_v49  ;;  %v466_v49 = vld [vmem:[%s4082_s1 + $0x70] sm:$0xff] }
 0x480   :  { %560 = vmax.xlane.f32.xlu1 %v559_v15  ;;  %v562_v23 = vmax.f32 %v3436_v10, %v531_v17  ;;  %v467_v15 = vld [vmem:[%s4082_s1 + $0x78] sm:$0xff] }
 0x482   :  { %v534_v20 = vpop.f32.mrb[8].mxu1  ;;  %563 = vmax.xlane.f32.xlu0 %v562_v23 }
 0x483   :  { %v3450_v32 = vadd.f32 %v534_v20, %v460_v22  ;;  %v536_v33 = vpop.f32.mrb[9].mxu1 }
 0x484   :  { %v3455_v40 = vadd.f32 %v536_v33, %v461_v1  ;;  %v538_v43 = vpop.f32.mrb[10].mxu1 }
 0x485   :  { %v3457_v45 = vadd.f32 %v538_v43, %v462_v12  ;;  %v540_v29 = vpop.f32.mrb[11].mxu1  ;;  %v768_v43 = vmul.bf16 %v3337_v26, %v3105_v11 }
 0x486   :  { %v565_v38 = vmax.f32 %v3450_v32, %v3455_v40  ;;  %v541_v52 = vadd.f32 %v540_v29, %v463_v37 }
 0x488   :  { %566 = vmax.xlane.f32.xlu1 %v565_v38  ;;  %v568_v54 = vmax.f32 %v3457_v45, %v541_v52 }
 0x48a   :  { %v544_v58 = vpop.f32.mrb[12].mxu1  ;;  %569 = vmax.xlane.f32.xlu0 %v568_v54 }
 0x48b   :  { %v3471_v7 = vadd.f32 %v544_v58, %v464_v53  ;;  %v546_v13 = vpop.f32.mrb[13].mxu1 }
 0x48c   :  { %v3476_v22 = vadd.f32 %v546_v13, %v465_v56  ;;  %v548_v23 = vpop.f32.mrb[14].mxu1 }
 0x48d   :  { %v3478_v1 = vadd.f32 %v548_v23, %v466_v49  ;;  %v550_v20 = vpop.f32.mrb[15].mxu1 }
 0x48e   :  { %v571_v12 = vmax.f32 %v3471_v7, %v3476_v22  ;;  %v551_v33 = vadd.f32 %v550_v20, %v467_v15 }
 0x490   :  { %572 = vmax.xlane.f32.xlu1 %v571_v12  ;;  %v574_v37 = vmax.f32 %v3478_v1, %v551_v33 }
 0x492   :  { %575 = vmax.xlane.f32.xlu0 %v574_v37 }
 0x4a1   :  { %807 = vrot.lane.b32.xlu1 %v768_v43, %s2894_s5 }
 0x4a8   :  { %839 = vrot.lane.b32.xlu0 %v3210_v46, %s2896_s23 }
 0x505   :  { %v555_v29 = vpop.xlane.xlu1 %554 }
 0x506   :  { %v578_v38 = vsub.f32 %v3413_v28, %v555_v29  ;;  %v577_v11 = vsub.f32 %v3408_v34, %v555_v29 }
 0x507   :  { %v558_v53 = vpop.xlane.xlu0 %557 }
 0x508   :  { %v580_v54 = vsub.f32 %v521_v51, %v558_v53  ;;  %v595_v56 = vmul.f32 1.442695, %v578_v38  ;;  %v579_v13 = vsub.f32 %v3415_v44, %v558_v53  ;;  %v593_v43 = vmul.f32 1.442695, %v577_v11 }
 0x50a   :  { %v599_v58 = vmul.f32 1.442695, %v580_v54  ;;  %v597_v12 = vmul.f32 1.442695, %v579_v13 }
 0x50c   :  { %2737 = vpow2.f32 %v599_v58 }
 0x50d   :  { %2739 = vpow2.f32 %v595_v56  ;;  %v561_v15 = vpop.xlane.xlu1 %560 }
 0x50e   :  { %v582_v20 = vsub.f32 %v3434_v3, %v561_v15  ;;  %2741 = vpow2.f32 %v597_v12 }
 0x50f   :  { %v564_v49 = vpop.xlane.xlu0 %563 }
 0x510   :  { %v584_v23 = vsub.f32 %v531_v17, %v564_v49  ;;  %v603_v51 = vmul.f32 1.442695, %v582_v20  ;;  %v583_v38 = vsub.f32 %v3436_v10, %v564_v49  ;;  %v581_v17 = vsub.f32 %v3429_v57, %v561_v15 }
 0x512   :  { %v607_v46 = vmul.f32 1.442695, %v584_v23  ;;  %v605_v3 = vmul.f32 1.442695, %v583_v38  ;;  %v601_v58 = vmul.f32 1.442695, %v581_v17 }
 0x514   :  { %2743 = vpow2.f32 %v607_v46 }
 0x515   :  { %v567_v54 = vpop.xlane.xlu1 %566  ;;  %2745 = vpow2.f32 %v593_v43 }
 0x516   :  { %v2738_v37 = vpop.eup %2737  ;;  %2747 = vpow2.f32 %v603_v51  ;;  %v586_v34 = vsub.f32 %v3455_v40, %v567_v54 }
 0x517   :  { %v570_v28 = vpop.xlane.xlu0 %569  ;;  %v2740_v27 = vpop.eup %2739  ;;  %2749 = vpow2.f32 %v605_v3 }
 0x518   :  { %v626_v56 = vpack.c.bf16 %v2738_v37, %v2740_v27  ;;  %v588_v44 = vsub.f32 %v541_v52, %v570_v28  ;;  %v611_v23 = vmul.f32 1.442695, %v586_v34  ;;  %v587_v10 = vsub.f32 %v3457_v45, %v570_v28  ;;  %v2742_v49 = vpop.eup %2741 }
 0x519   :  { %v585_v52 = vsub.f32 %v3450_v32, %v567_v54 }
 0x51a   :  { %953 = vmatprep.mubr.bf16.mxu0 %v626_v56  ;;  %v615_v53 = vmul.f32 1.442695, %v588_v44  ;;  %v613_v46 = vmul.f32 1.442695, %v587_v10 }
 0x51b   :  { %v609_v43 = vmul.f32 1.442695, %v585_v52  ;;  %v4114_v52 = vmov 0  }
 0x51c   :  { %2751 = vpow2.f32 %v615_v53 }
 0x51d   :  { %v573_v29 = vpop.xlane.xlu1 %572  ;;  %2753 = vpow2.f32 %v601_v58 }
 0x51e   :  { %v2744_v11 = vpop.eup %2743  ;;  %2755 = vpow2.f32 %v611_v23  ;;  %v590_v40 = vsub.f32 %v3476_v22, %v573_v29  ;;  %v589_v22 = vsub.f32 %v3471_v7, %v573_v29 }
 0x51f   :  { %v576_v13 = vpop.xlane.xlu0 %575  ;;  %v2746_v12 = vpop.eup %2745  ;;  %2757 = vpow2.f32 %v613_v46 }
 0x520   :  { %v592_v27 = vsub.f32 %v551_v33, %v576_v13  ;;  %v2748_v45 = vpop.eup %2747  ;;  %v625_v33 = vpack.c.bf16 %v2742_v49, %v2746_v12  ;;  %v619_v51 = vmul.f32 1.442695, %v590_v40  ;;  %v591_v32 = vsub.f32 %v3478_v1, %v576_v13 }
 0x521   :  { %v808_v57 = vpop.permute.xlu1 %807  ;;  %v628_v28 = vpack.c.bf16 %v2744_v11, %v2748_v45  ;;  %v2750_v38 = vpop.eup %2749  ;;  %v617_v3 = vmul.f32 1.442695, %v589_v22  ;;  %v2709_v45 = vld [vmem:[%s4083_s7] sm:$0xff]  }
 0x522   :  { %v623_v37 = vmul.f32 1.442695, %v592_v27  ;;  %v621_v44 = vmul.f32 1.442695, %v591_v32  ;;  %2616 = vmatprep.subr.bf16.mxu1 %v2709_v45 }
 0x523   :  { %v3497_v15 = vpop.permute.xlu0 %839  ;;  %2617 = vmatpush3.bf16.msra.mxu1 %v2709_v45 }
 0x524   :  { %v887_v20 = vsel %vm109_vm0, %v808_v57, %v3497_v15  ;;  %2759 = vpow2.f32 %v623_v37 }
 0x525   :  { %2507 = vmatpush3.bf16.msra.mxu0 %v887_v20  ;;  %2761 = vpow2.f32 %v609_v43 }
 0x526   :  { %v2752_v54 = vpop.eup %2751  ;;  %2763 = vpow2.f32 %v619_v51 }
 0x527   :  { %v2754_v56 = vpop.eup %2753  ;;  %2765 = vpow2.f32 %v621_v44 }
 0x528   :  { %954 = vmatmul.mubr.bf16.vlgmr.msra.gmra.mrb[8].mxu0 %v625_v33  ;;  %v2756_v17 = vpop.eup %2755  ;;  %v627_v34 = vpack.c.bf16 %v2750_v38, %v2754_v56  ;;  %2767 = vpow2.f32 %v617_v3  ;;  %v2710_v38 = vld [vmem:[%s4083_s7 + $0x8] sm:$0xff]  }
 0x529   :  { %961 = vmatprep.mubr.bf16.mxu0 %v628_v28  ;;  %v630_v53 = vpack.c.bf16 %v2752_v54, %v2756_v17  ;;  %v2758_v58 = vpop.eup %2757  ;;  %2618 = vmatprep.subr.bf16.mxu1 %v2710_v38 }
 0x52a   :  { %2619 = vmatpush3.bf16.msra.mxu1 %v2710_v38 }
 0x52e   :  { %v2760_v1 = vpop.eup %2759 }
 0x52f   :  { %v2762_v13 = vpop.eup %2761 }
 0x530   :  { %962 = vmatmul.mubr.bf16.gmra.mrb[12].mxu0 %v627_v34  ;;  %v2764_v23 = vpop.eup %2763  ;;  %v629_v10 = vpack.c.bf16 %v2758_v58, %v2762_v13 }
 0x531   :  { %969 = vmatprep.mubr.bf16.mxu0 %v630_v53  ;;  %v632_v27 = vpack.c.bf16 %v2760_v1, %v2764_v23  ;;  %v2766_v7 = vpop.eup %2765 }
 0x532   :  { %v2768_v29 = vpop.eup %2767 }
 0x533   :  { %v631_v49 = vpack.c.bf16 %v2766_v7, %v2768_v29 }
 0x538   :  { %970 = vmatmul.mubr.bf16.gmra.mrb[16].mxu0 %v629_v10 }
 0x539   :  { %977 = vmatprep.mubr.bf16.mxu0 %v632_v27 }
 0x540   :  { %978 = vmatmul.mubr.bf16.gmra.mrb[20].mxu0 %v631_v49 }
 0x541   :  { %1528 = vmatprep.mubr.bf16.mxu0 %v4114_v52 }
 0x5fb   :  { %v2508_v57 = vpop.f32.mrb[8].mxu0 }
 0x5fc   :  { %v2509_v11 = vpop.f32.mrb[9].mxu0 }
 0x5fd   :  { %v2510_v40 = vadd.f32 %v2509_v11, %v2508_v57  ;;  %v2511_v20 = vpop.f32.mrb[10].mxu0 }
 0x5fe   :  { %v2512_v12 = vpop.f32.mrb[11].mxu0 }
 0x5ff   :  { %2769 = vrcp.f32 %v2510_v40  ;;  %v2513_v46 = vadd.f32 %v2512_v12, %v2511_v20 }
 0x601   :  { %2771 = vrcp.f32 %v2513_v46 }
 0x603   :  { %v2514_v37 = vpop.f32.mrb[12].mxu0 }
 0x604   :  { %v2515_v33 = vpop.f32.mrb[13].mxu0 }
 0x605   :  { %v2516_v43 = vadd.f32 %v2515_v33, %v2514_v37  ;;  %v2517_v28 = vpop.f32.mrb[14].mxu0 }
 0x606   :  { %v2518_v51 = vpop.f32.mrb[15].mxu0 }
 0x607   :  { %2773 = vrcp.f32 %v2516_v43  ;;  %v2519_v32 = vadd.f32 %v2518_v51, %v2517_v28 }
 0x609   :  { %v2770_v22 = vpop.eup %2769  ;;  %2775 = vrcp.f32 %v2519_v32 }
 0x60a   :  { %1002 = vrot.lane.b32.xlu1 %v2770_v22, %s2893_s30 }
 0x60b   :  { %v2772_v54 = vpop.eup %2771  ;;  %v2520_v56 = vpop.f32.mrb[16].mxu0 }
 0x60c   :  { %v2521_v44 = vpop.f32.mrb[17].mxu0  ;;  %1004 = vrot.lane.b32.xlu0 %v2772_v54, %s2893_s30 }
 0x60d   :  { %v2522_v17 = vadd.f32 %v2521_v44, %v2520_v56  ;;  %v2523_v34 = vpop.f32.mrb[18].mxu0 }
 0x60e   :  { %v2524_v3 = vpop.f32.mrb[19].mxu0 }
 0x60f   :  { %2777 = vrcp.f32 %v2522_v17  ;;  %v2525_v53 = vadd.f32 %v2524_v3, %v2523_v34 }
 0x611   :  { %v2774_v58 = vpop.eup %2773  ;;  %2779 = vrcp.f32 %v2525_v53 }
 0x612   :  { %1006 = vrot.lane.b32.xlu1 %v2774_v58, %s2893_s30 }
 0x613   :  { %v2776_v1 = vpop.eup %2775  ;;  %v2526_v13 = vpop.f32.mrb[20].mxu0 }
 0x614   :  { %v2527_v23 = vpop.f32.mrb[21].mxu0  ;;  %1008 = vrot.lane.b32.xlu0 %v2776_v1, %s2893_s30 }
 0x615   :  { %v2528_v10 = vadd.f32 %v2527_v23, %v2526_v13  ;;  %v2529_v27 = vpop.f32.mrb[22].mxu0 }
 0x616   :  { %v2530_v7 = vpop.f32.mrb[23].mxu0 }
 0x617   :  { %2781 = vrcp.f32 %v2528_v10  ;;  %v2531_v29 = vadd.f32 %v2530_v7, %v2529_v27 }
 0x619   :  { %v2778_v49 = vpop.eup %2777  ;;  %2783 = vrcp.f32 %v2531_v29 }
 0x61a   :  { %1010 = vrot.lane.b32.xlu1 %v2778_v49, %s2893_s30 }
 0x61b   :  { %v2780_v57 = vpop.eup %2779 }
 0x61c   :  { %1012 = vrot.lane.b32.xlu0 %v2780_v57, %s2893_s30 }
 0x621   :  { %v2782_v11 = vpop.eup %2781 }
 0x622   :  { %1014 = vrot.lane.b32.xlu1 %v2782_v11, %s2893_s30 }
 0x623   :  { %v2784_v20 = vpop.eup %2783 }
 0x624   :  { %1016 = vrot.lane.b32.xlu0 %v2784_v20, %s2893_s30  ;;  %v2881_v20 = vld [vmem:[%s4110_s20] sm:$0xff] }
 0x67c   :  { %v1003_v12 = vpop.permute.xlu1 %1002 }
 0x67d   :  { %v1026_v37 = vmul.f32 %v2510_v40, %v1003_v12  ;;  %v2882_v12 = vld [vmem:[%s4110_s20 + $0x18] sm:$0xff] }
 0x67e   :  { %v1005_v45 = vpop.permute.xlu0 %1004 }
 0x67f   :  { %v1027_v33 = vmul.f32 %v2513_v46, %v1005_v45 }
 0x681   :  { %v1034_v28 = vpack.c.bf16 %v1027_v33, %v1026_v37  ;;  %v2883_v37 = vld [vmem:[%s4110_s20 + $0x8] sm:$0xff] }
 0x683   :  { %2620 = vmatprep.mubr.msk.bf16.mxu1 %vm109_vm0, %v1034_v28 }
 0x684   :  { %v1007_v51 = vpop.permute.xlu1 %1006 }
 0x685   :  { %v1028_v22 = vmul.f32 %v2516_v43, %v1007_v51  ;;  %v2441_v43 = vld [vmem:[%s4084_s8] ss:$0 sm:$0xff]  ;;  %v2884_v51 = vld [vmem:[%s4110_s20 + $0x10] sm:$0xff] }
 0x686   :  { %v1009_v38 = vpop.permute.xlu0 %1008 }
 0x687   :  { %v1029_v54 = vmul.f32 %v2519_v32, %v1009_v38 }
 0x689   :  { %v1035_v56 = vpack.c.bf16 %v1029_v54, %v1028_v22 }
 0x68b   :  { %2621 = vmatmul.mubr.msk.bf16.vlgmr.msra.gmra.mrb[16].mxu1 %vm109_vm0, %v1035_v56 }
 0x68c   :  { %v1011_v44 = vpop.permute.xlu1 %1010 }
 0x68d   :  { %v1030_v3 = vmul.f32 %v2522_v17, %v1011_v44 }
 0x68e   :  { %v1013_v34 = vpop.permute.xlu0 %1012 }
 0x68f   :  { %v1031_v58 = vmul.f32 %v2525_v53, %v1013_v34 }
 0x691   :  { %v1036_v1 = vpack.c.bf16 %v1031_v58, %v1030_v3 }
 0x693   :  { %2624 = vmatprep.mubr.msk.bf16.mxu1 %vm109_vm0, %v1036_v1 }
 0x694   :  { %v1015_v13 = vpop.permute.xlu1 %1014 }
 0x695   :  { %v1032_v46 = vmul.f32 %v2528_v10, %v1015_v13 }
 0x696   :  { %v1017_v40 = vpop.permute.xlu0 %1016 }
 0x697   :  { %v1033_v23 = vmul.f32 %v2531_v29, %v1017_v40  ;;  %v2885_v40 = vld [vmem:[%s4110_s20 + $0x20] sm:$0xff] }
 0x699   :  { %v1037_v27 = vpack.c.bf16 %v1033_v23, %v1032_v46 }
 0x69b   :  { %2625 = vmatmul.mubr.msk.bf16.gmra.mrb[20].mxu1 %vm109_vm0, %v1037_v27 }
 0x75e   :  { %v2622_v32 = vpop.f32.mrb[16].mxu1 }
 0x75f   :  { %v1107_v7 = vpop.f32.mrb[17].mxu1  ;;  %v1116_v11 = vadd.f32 %v2622_v32, %v2441_v43  ;;  %v2886_v32 = vld [vmem:[%s4110_s20 + $0x30] sm:$0xff] }
 0x760   :  { %v1108_v49 = vadd.f32 %v2441_v43, %v1107_v7  ;;  %v2623_v57 = vpop.f32.mrb[18].mxu1 }
 0x761   :  { %v1119_v17 = vadd.f32 %v2623_v57, %v2441_v43  ;;  %v1110_v53 = vpop.f32.mrb[19].mxu1  ;;  %v3546_v38 = vadd.f32 %v2884_v51, %v1116_v11 }
 0x762   :  { %v3529_v10 = vadd.f32 %v2881_v20, %v1108_v49  ;;  %v1111_v29 = vadd.f32 %v2441_v43, %v1110_v53  ;;  %v2887_v49 = vld [vmem:[%s4110_s20 + $0x28] sm:$0xff] }
 0x763   :  { %v3534_v45 = vadd.f32 %v2882_v12, %v1119_v17  ;;  %4115 = vst [vmem:[#allocation2_spill] sm:$0xff] %v3546_v38  ;;  %v1154_v56 = vsel %vm109_vm0, %v3546_v38, 0.0 }
 0x764   :  { %v3539_v33 = vadd.f32 %v2883_v37, %v1111_v29  ;;  %v1148_v28 = vsel %vm109_vm0, %v3529_v10, 0.0 }
 0x765   :  { %1149 = vadd.xlane.f32.xlu1 %v1148_v28  ;;  %v1157_v54 = vsel %vm109_vm0, %v3534_v45, 0.0 }
 0x766   :  { %v1151_v22 = vsel %vm109_vm0, %v3539_v33, 0.0 }
 0x767   :  { %1152 = vadd.xlane.f32.xlu0 %v1151_v22 }
 0x769   :  { %1158 = vadd.xlane.f32.xlu1 %v1157_v54 }
 0x76b   :  { %1155 = vadd.xlane.f32.xlu0 %v1154_v56 }
 0x76e   :  { %v2626_v44 = vpop.f32.mrb[20].mxu1 }
 0x76f   :  { %v1123_v34 = vpop.f32.mrb[21].mxu1  ;;  %v1132_v3 = vadd.f32 %v2626_v44, %v2441_v43 }
 0x770   :  { %v1124_v58 = vadd.f32 %v2441_v43, %v1123_v34  ;;  %v2627_v1 = vpop.f32.mrb[22].mxu1 }
 0x771   :  { %v1126_v13 = vpop.f32.mrb[23].mxu1  ;;  %v1135_v23 = vadd.f32 %v2627_v1, %v2441_v43  ;;  %v3562_v7 = vadd.f32 %v2886_v32, %v1132_v3 }
 0x772   :  { %v3557_v46 = vadd.f32 %v2885_v40, %v1124_v58  ;;  %v1127_v27 = vadd.f32 %v2441_v43, %v1126_v13  ;;  %v2888_v43 = vld [vmem:[%s4110_s20 + $0x38] sm:$0xff] }
 0x773   :  { %4117 = vst [vmem:[#allocation4_spill] sm:$0xff] %v3562_v7  ;;  %v3574_v53 = vadd.f32 %v2888_v43, %v1135_v23  ;;  %v1166_v20 = vsel %vm109_vm0, %v3562_v7, 0.0 }
 0x774   :  { %4116 = vst [vmem:[#allocation3_spill] sm:$0xff] %v3557_v46  ;;  %v3567_v57 = vadd.f32 %v2887_v49, %v1127_v27  ;;  %v1160_v17 = vsel %vm109_vm0, %v3557_v46, 0.0 }
 0x775   :  { %1161 = vadd.xlane.f32.xlu0 %v1160_v17  ;;  %4119 = vst [vmem:[#allocation6_spill] sm:$0xff] %v3574_v53  ;;  %v1169_v29 = vsel %vm109_vm0, %v3574_v53, 0.0 }
 0x776   :  { %4118 = vst [vmem:[#allocation5_spill] sm:$0xff] %v3567_v57  ;;  %v1163_v11 = vsel %vm109_vm0, %v3567_v57, 0.0 }
 0x777   :  { %1164 = vadd.xlane.f32.xlu1 %v1163_v11 }
 0x779   :  { %1167 = vadd.xlane.f32.xlu0 %v1166_v20 }
 0x77b   :  { %1170 = vadd.xlane.f32.xlu1 %v1169_v29 }
 0x7f2   :  { %v1150_v12 = vpop.xlane.xlu1 %1149 }
 0x7f3   :  { %v1172_v37 = vmul.f32 0.03125, %v1150_v12 }
 0x7f4   :  { %v1153_v28 = vpop.xlane.xlu0 %1152 }
 0x7f5   :  { %v3583_v51 = vsub.f32 %v3529_v10, %v1172_v37  ;;  %v1173_v22 = vmul.f32 0.03125, %v1153_v28 }
 0x7f6   :  { %v1159_v54 = vpop.xlane.xlu1 %1158 }
 0x7f7   :  { %v3586_v56 = vsub.f32 %v3539_v33, %v1173_v22  ;;  %v1175_v44 = vmul.f32 0.03125, %v1159_v54  ;;  %v1188_v34 = vmul.f32 %v3583_v51, %v3583_v51 }
 0x7f8   :  { %v1156_v3 = vpop.xlane.xlu0 %1155 }
 0x7f9   :  { %v3591_v58 = vsub.f32 %v3534_v45, %v1175_v44  ;;  %v1174_v1 = vmul.f32 0.03125, %v1156_v3  ;;  %v1196_v13 = vsel %vm109_vm0, %v1188_v34, 0.0  ;;  %v1189_v40 = vmul.f32 %v3586_v56, %v3586_v56 }
 0x7fa   :  { %1197 = vadd.xlane.f32.xlu0 %v1196_v13 }
 0x7fb   :  { %v3597_v23 = vsub.f32 %v3546_v38, %v1174_v1  ;;  %v1199_v27 = vsel %vm109_vm0, %v1189_v40, 0.0  ;;  %v1191_v32 = vmul.f32 %v3591_v58, %v3591_v58 }
 0x7fc   :  { %1200 = vadd.xlane.f32.xlu1 %v1199_v27 }
 0x7fd   :  { %v1190_v49 = vmul.f32 %v3597_v23, %v3597_v23  ;;  %v1205_v43 = vsel %vm109_vm0, %v1191_v32, 0.0 }
 0x7ff   :  { %v1202_v17 = vsel %vm109_vm0, %v1190_v49, 0.0 }
 0x800   :  { %1203 = vadd.xlane.f32.xlu0 %v1202_v17  ;;  %1206 = vadd.xlane.f32.xlu1 %v1205_v43 }
 0x802   :  { %v1162_v11 = vpop.xlane.xlu0 %1161 }
 0x803   :  { %v1176_v20 = vmul.f32 0.03125, %v1162_v11 }
 0x804   :  { %v1165_v29 = vpop.xlane.xlu1 %1164 }
 0x805   :  { %v3607_v12 = vsub.f32 %v3557_v46, %v1176_v20  ;;  %v1177_v37 = vmul.f32 0.03125, %v1165_v29  ;;  %v2711_v20 = vld [vmem:[%s4085_s9] sm:$0xff]   ;;  %v2712_v29 = vld [vmem:[%s4085_s9 + $0x8] sm:$0xff]  }
 0x806   :  { %v1168_v28 = vpop.xlane.xlu0 %1167  ;;  %2628 = vmatprep.subr.bf16.mxu1 %v2711_v20 }
 0x807   :  { %v3610_v22 = vsub.f32 %v3567_v57, %v1177_v37  ;;  %v1178_v54 = vmul.f32 0.03125, %v1168_v28  ;;  %v1192_v44 = vmul.f32 %v3607_v12, %v3607_v12  ;;  %2629 = vmatpush3.bf16.msra.mxu1 %v2711_v20  ;;  %v2448_v20 = vld [vmem:[%s4112_s14 + $0x1] ss:$0 sm:$0xff] }
 0x808   :  { %v1171_v34 = vpop.xlane.xlu1 %1170  ;;  %2630 = vmatprep.subr.bf16.mxu1 %v2712_v29 }
 0x809   :  { %v3615_v3 = vsub.f32 %v3562_v7, %v1178_v54  ;;  %v1179_v1 = vmul.f32 0.03125, %v1171_v34  ;;  %v1208_v13 = vsel %vm109_vm0, %v1192_v44, 0.0  ;;  %v1193_v40 = vmul.f32 %v3610_v22, %v3610_v22 }
 0x80a   :  { %1209 = vadd.xlane.f32.xlu0 %v1208_v13 }
 0x80b   :  { %v3621_v27 = vsub.f32 %v3574_v53, %v1179_v1  ;;  %v1211_v32 = vsel %vm109_vm0, %v1193_v40, 0.0  ;;  %v1194_v49 = vmul.f32 %v3615_v3, %v3615_v3  ;;  %2631 = vmatpush3.bf16.msra.mxu1 %v2712_v29 }
 0x80c   :  { %1212 = vadd.xlane.f32.xlu1 %v1211_v32 }
 0x80d   :  { %v1214_v17 = vsel %vm109_vm0, %v1194_v49, 0.0  ;;  %v1195_v43 = vmul.f32 %v3621_v27, %v3621_v27 }
 0x80e   :  { %1215 = vadd.xlane.f32.xlu0 %v1214_v17 }
 0x80f   :  { %v1217_v11 = vsel %vm109_vm0, %v1195_v43, 0.0 }
 0x810   :  { %1218 = vadd.xlane.f32.xlu1 %v1217_v11 }
 0x887   :  { %v1198_v37 = vpop.xlane.xlu0 %1197 }
 0x888   :  { %v1220_v28 = vmul.f32 0.03125, %v1198_v37 }
 0x889   :  { %v1201_v54 = vpop.xlane.xlu1 %1200 }
 0x88a   :  { %v1228_v44 = vadd.f32 1e-12, %v1220_v28  ;;  %v1221_v34 = vmul.f32 0.03125, %v1201_v54  ;;  %v2449_v54 = vld [vmem:[%s4113_s28 + $0x1] ss:$0 sm:$0xff] }
 0x88c   :  { %2785 = vrsqrt.f32 %v1228_v44  ;;  %v1229_v1 = vadd.f32 1e-12, %v1221_v34 }
 0x88d   :  { %v1204_v13 = vpop.xlane.xlu0 %1203  ;;  %v1207_v40 = vpop.xlane.xlu1 %1206 }
 0x88e   :  { %2787 = vrsqrt.f32 %v1229_v1  ;;  %v1222_v32 = vmul.f32 0.03125, %v1204_v13  ;;  %v1223_v49 = vmul.f32 0.03125, %v1207_v40 }
 0x890   :  { %v1230_v17 = vadd.f32 1e-12, %v1222_v32  ;;  %v1231_v43 = vadd.f32 1e-12, %v1223_v49 }
 0x892   :  { %2789 = vrsqrt.f32 %v1230_v17 }
 0x893   :  { %2791 = vrsqrt.f32 %v1231_v43 }
 0x896   :  { %v2786_v11 = vpop.eup %2785 }
 0x897   :  { %v1244_v29 = vmul.f32 %v2786_v11, %v3583_v51  ;;  %v1210_v37 = vpop.xlane.xlu0 %1209 }
 0x898   :  { %v2788_v28 = vpop.eup %2787  ;;  %v1224_v44 = vmul.f32 0.03125, %v1210_v37 }
 0x899   :  { %v1245_v34 = vmul.f32 %v2788_v28, %v3586_v56  ;;  %v1213_v1 = vpop.xlane.xlu1 %1212  ;;  %v1256_v13 = vmul.f32 %v2448_v20, %v1244_v29 }
 0x89a   :  { %v1232_v40 = vadd.f32 1e-12, %v1224_v44  ;;  %v1225_v32 = vmul.f32 0.03125, %v1213_v1 }
 0x89b   :  { %v1216_v49 = vpop.xlane.xlu0 %1215  ;;  %v1257_v17 = vmul.f32 %v2448_v20, %v1245_v34  ;;  %v1268_v43 = vadd.f32 %v2449_v54, %v1256_v13 }
 0x89c   :  { %v2790_v53 = vpop.eup %2789  ;;  %2793 = vrsqrt.f32 %v1232_v40  ;;  %v1233_v57 = vadd.f32 1e-12, %v1225_v32  ;;  %v1226_v51 = vmul.f32 0.03125, %v1216_v49 }
 0x89d   :  { %v2792_v11 = vpop.eup %2791  ;;  %v1246_v7 = vmul.f32 %v2790_v53, %v3597_v23  ;;  %v1219_v46 = vpop.xlane.xlu1 %1218  ;;  %v1269_v38 = vadd.f32 %v2449_v54, %v1257_v17 }
 0x89e   :  { %v1247_v37 = vmul.f32 %v2792_v11, %v3591_v58  ;;  %2795 = vrsqrt.f32 %v1233_v57  ;;  %v1234_v56 = vadd.f32 1e-12, %v1226_v51  ;;  %v1227_v28 = vmul.f32 0.03125, %v1219_v46 }
 0x89f   :  { %v1258_v29 = vmul.f32 %v2448_v20, %v1246_v7  ;;  %v1276_v44 = vpack.c.bf16 %v1269_v38, %v1268_v43 }
 0x8a0   :  { %v1259_v1 = vmul.f32 %v2448_v20, %v1247_v37  ;;  %2797 = vrsqrt.f32 %v1234_v56  ;;  %v1235_v34 = vadd.f32 1e-12, %v1227_v28 }
 0x8a1   :  { %v1270_v13 = vadd.f32 %v2449_v54, %v1258_v29  ;;  %2632 = vmatprep.mubr.msk.bf16.mxu1 %vm109_vm0, %v1276_v44 }
 0x8a2   :  { %v1271_v40 = vadd.f32 %v2449_v54, %v1259_v1  ;;  %2799 = vrsqrt.f32 %v1235_v34 }
 0x8a4   :  { %v1277_v32 = vpack.c.bf16 %v1271_v40, %v1270_v13 }
 0x8a6   :  { %v2794_v49 = vpop.eup %2793  ;;  %2633 = vmatmul.mubr.msk.bf16.vlgmr.msra.gmra.mrb[24].mxu1 %vm109_vm0, %v1277_v32 }
 0x8a7   :  { %v1248_v53 = vmul.f32 %v2794_v49, %v3607_v12 }
 0x8a8   :  { %v2796_v58 = vpop.eup %2795 }
 0x8a9   :  { %v1249_v57 = vmul.f32 %v2796_v58, %v3610_v22  ;;  %v1260_v46 = vmul.f32 %v2448_v20, %v1248_v53  ;;  %v2450_v22 = vld [vmem:[%s4086_s10] ss:$0 sm:$0xff] }
 0x8aa   :  { %v2798_v7 = vpop.eup %2797 }
 0x8ab   :  { %v1250_v38 = vmul.f32 %v2798_v7, %v3615_v3  ;;  %v1261_v23 = vmul.f32 %v2448_v20, %v1249_v57  ;;  %v1272_v17 = vadd.f32 %v2449_v54, %v1260_v46 }
 0x8ac   :  { %v2800_v43 = vpop.eup %2799 }
 0x8ad   :  { %v1251_v51 = vmul.f32 %v2800_v43, %v3621_v27  ;;  %v1273_v11 = vadd.f32 %v2449_v54, %v1261_v23  ;;  %v1262_v37 = vmul.f32 %v2448_v20, %v1250_v38 }
 0x8af   :  { %v1278_v56 = vpack.c.bf16 %v1273_v11, %v1272_v17  ;;  %v1263_v28 = vmul.f32 %v2448_v20, %v1251_v51  ;;  %v1274_v29 = vadd.f32 %v2449_v54, %v1262_v37 }
 0x8b1   :  { %2636 = vmatprep.mubr.msk.bf16.mxu1 %vm109_vm0, %v1278_v56  ;;  %v1275_v12 = vadd.f32 %v2449_v54, %v1263_v28 }
 0x8b3   :  { %v1279_v44 = vpack.c.bf16 %v1275_v12, %v1274_v29 }
 0x8b5   :  { %2637 = vmatmul.mubr.msk.bf16.gmra.mrb[28].mxu1 %vm109_vm0, %v1279_v44 }
 0x979   :  { %v2634_v3 = vpop.f32.mrb[24].mxu1 }
 0x97a   :  { %v1358_v1 = vadd.f32 %v2634_v3, %v2450_v22  ;;  %v1349_v34 = vpop.f32.mrb[25].mxu1 }
 0x97b   :  { %v1350_v13 = vadd.f32 %v2450_v22, %v1349_v34  ;;  %v2635_v27 = vpop.f32.mrb[26].mxu1 }
 0x97c   :  { %v1361_v40 = vadd.f32 %v2635_v27, %v2450_v22  ;;  %1396 = vrot.lane.b32.xlu1 %v1358_v1, %s2893_s30  ;;  %v1352_v20 = vpop.f32.mrb[27].mxu1 }
 0x97d   :  { %v1353_v32 = vadd.f32 %v2450_v22, %v1352_v20  ;;  %1392 = vrot.lane.b32.xlu0 %v1350_v13, %s2893_s30 }
 0x97e   :  { %v3659_v54 = vpack.c.bf16 %v1361_v40, %v1358_v1 }
 0x97f   :  { %v3661_v49 = vpack.c.bf16 %v1353_v32, %v1350_v13 }
 0x980   :  { %1394 = vrot.lane.b32.xlu1 %v1353_v32, %s2893_s30  ;;  %v1658_v3 = vmul.bf16 %v3659_v54, %v3239_v60  ;;  %v1662_v34 = vmul.bf16 %v3659_v54, %v3294_v14 }
 0x981   :  { %1398 = vrot.lane.b32.xlu0 %v1361_v40, %s2893_s30  ;;  %v1649_v14 = vmul.bf16 %v3661_v49, %v3235_v59 }
 0x988   :  { %v2638_v53 = vpop.f32.mrb[28].mxu1 }
 0x989   :  { %v1374_v58 = vadd.f32 %v2638_v53, %v2450_v22  ;;  %v1365_v57 = vpop.f32.mrb[29].mxu1  ;;  %v1650_v53 = vmul.bf16 %v3659_v54, %v3246_v62  ;;  %v1661_v62 = vmul.bf16 %v3661_v49, %v3280_v8 }
 0x98a   :  { %v2639_v46 = vpop.f32.mrb[30].mxu1  ;;  %v1366_v23 = vadd.f32 %v2450_v22, %v1365_v57 }
 0x98b   :  { %v1377_v7 = vadd.f32 %v2639_v46, %v2450_v22  ;;  %1404 = vrot.lane.b32.xlu1 %v1374_v58, %s2893_s30  ;;  %v1368_v38 = vpop.f32.mrb[31].mxu1  ;;  %v2889_v46 = vld [vmem:[%s4081_s3] ss:$8 sps:$4 sm:$0xff]  }
 0x98c   :  { %v1369_v17 = vadd.f32 %v2450_v22, %v1368_v38 }
 0x98d   :  { %v3666_v43 = vpack.c.bf16 %v1377_v7, %v1374_v58 }
 0x98e   :  { %v3668_v51 = vpack.c.bf16 %v1369_v17, %v1366_v23  ;;  %1402 = vrot.lane.b32.xlu0 %v1369_v17, %s2893_s30 }
 0x98f   :  { %1400 = vrot.lane.b32.xlu1 %v1366_v23, %s2893_s30  ;;  %v1652_v1 = vmul.bf16 %v3666_v43, %v3273_v6  ;;  %v1657_v6 = vmul.bf16 %v3661_v49, %v3228_v48  ;;  %v1660_v59 = vmul.bf16 %v3666_v43, %v3266_v5  ;;  %v2891_v23 = vld [vmem:[%s4081_s3 + $0x10] ss:$8 sps:$4 sm:$0xff]  }
 0x990   :  { %v1659_v58 = vmul.bf16 %v3668_v51, %v3252_v63  ;;  %v1651_v48 = vmul.bf16 %v3668_v51, %v3257_v0  ;;  %v1653_v63 = vmul.bf16 %v3661_v49, %v3286_v9  ;;  %v1654_v0 = vmul.bf16 %v3659_v54, %v3301_v16 }
 0x991   :  { %v1663_v5 = vmul.bf16 %v3668_v51, %v3322_v24  ;;  %v1655_v8 = vmul.bf16 %v3668_v51, %v3308_v18 }
 0x992   :  { %1406 = vrot.lane.b32.xlu0 %v1377_v7, %s2893_s30  ;;  %v2890_v7 = vld [vmem:[%s4081_s3 + $0x4] ss:$8 sps:$4 sm:$0xff]  }
 0x9ee   :  { %v1397_v11 = vpop.permute.xlu1 %1396 }
 0x9ef   :  { %v1393_v37 = vpop.permute.xlu0 %1392 }
 0x9f0   :  { %1416 = vxpose.xlu1.b32.start [1/8] (short) (narrow) %v1393_v37, 32 }
 0x9f2   :  { %v1395_v56 = vpop.permute.xlu1 %1394 }
 0x9f3   :  { %v1399_v28 = vpop.permute.xlu0 %1398 }
 0x9f4   :  { %1417 = vxpose.xlu1.b32.cont [2/8] (short) (narrow) %v1395_v56, 32 }
 0x9f8   :  { %1418 = vxpose.xlu1.b32.cont [3/8] (short) (narrow) %v1397_v11, 32  ;;  %v2892_v11 = vld [vmem:[%s4081_s3 + $0x14] ss:$8 sps:$4 sm:$0xff]  }
 0x9fc   :  { %1419 = vxpose.xlu1.b32.cont [4/8] (short) (narrow) %v1399_v28, 32 }
 0x9fd   :  { %v1405_v29 = vpop.permute.xlu1 %1404 }
 0xa00   :  { %v1403_v44 = vpop.permute.xlu0 %1402 }
 0xa01   :  { %v1401_v12 = vpop.permute.xlu1 %1400 }
 0xa02   :  { %1420 = vxpose.xlu1.b32.cont [5/8] (short) (narrow) %v1401_v12, 32 }
 0xa04   :  { %v1407_v22 = vpop.permute.xlu0 %1406 }
 0xa06   :  { %1421 = vxpose.xlu1.b32.cont [6/8] (short) (narrow) %v1403_v44, 32 }
 0xa0a   :  { %1422 = vxpose.xlu1.b32.cont [7/8] (short) (narrow) %v1405_v29, 32 }
 0xa0e   :  { %1423 = vxpose.xlu1.b32.end [8/8] (short) (narrow) %v1407_v22, 32 }
 0xa2c   :  { %1699 = vrot.lane.b32.xlu1 %v1658_v3, %s2894_s5 }
 0xa30   :  { %1687 = vrot.lane.b32.xlu1 %v1652_v1, %s2894_s5 }
 0xa34   :  { %1707 = vrot.lane.b32.xlu1 %v1662_v34, %s2894_s5 }
 0xa72   :  { %v1432_v13 = vpop.trf.xlu1 }
 0xa76   :  { %v1433_v27 = vpop.trf.xlu1 }
 0xa77   :  { %v1448_v40 = vpack.c.bf16 %v1433_v27, %v1432_v13 }
 0xa79   :  { %1452 = vrot.lane.b32.xlu0 %v1448_v40, %s2894_s5 }
 0xa7a   :  { %v1434_v20 = vpop.trf.xlu1 }
 0xa7e   :  { %v1435_v32 = vpop.trf.xlu1 }
 0xa7f   :  { %v1449_v60 = vpack.c.bf16 %v1435_v32, %v1434_v20 }
 0xa81   :  { %1454 = vrot.lane.b32.xlu0 %v1449_v60, %s2894_s5 }
 0xa85   :  { %1697 = vrot.lane.b32.xlu0 %v1657_v6, %s2894_s5 }
 0xa89   :  { %1681 = vrot.lane.b32.xlu0 %v1649_v14, %s2894_s5 }
 0xa8d   :  { %1683 = vrot.lane.b32.xlu0 %v1650_v53, %s2894_s5 }
 0xa91   :  { %1701 = vrot.lane.b32.xlu0 %v1659_v58, %s2894_s5 }
 0xa95   :  { %1685 = vrot.lane.b32.xlu0 %v1651_v48, %s2894_s5 }
 0xa99   :  { %1703 = vrot.lane.b32.xlu0 %v1660_v59, %s2894_s5 }
 0xa9d   :  { %1705 = vrot.lane.b32.xlu0 %v1661_v62, %s2894_s5 }
 0xa9e   :  { %v1700_v29 = vpop.permute.xlu1 %1699 }
 0xa9f   :  { %v1741_v22 = vsel %vm109_vm0, %v1700_v29, %v3349_v36 }
 0xaa1   :  { %1689 = vrot.lane.b32.xlu0 %v1653_v63, %s2894_s5 }
 0xaa2   :  { %v1688_v34 = vpop.permute.xlu1 %1687 }
 0xaa5   :  { %1691 = vrot.lane.b32.xlu0 %v1654_v0, %s2894_s5  ;;  %v1472_v0 = vld [vmem:[%s4087_s2 + $0x20] sm:$0xff] }
 0xaa6   :  { %v1708_v27 = vpop.permute.xlu1 %1707 }
 0xaa9   :  { %1709 = vrot.lane.b32.xlu0 %v1663_v5, %s2894_s5  ;;  %v1473_v5 = vld [vmem:[%s4087_s2 + $0x28] sm:$0xff] }
 0xaad   :  { %1693 = vrot.lane.b32.xlu0 %v1655_v8, %s2894_s5 }
 0xaeb   :  { %v1453_v57 = vpop.permute.xlu0 %1452 }
 0xaec   :  { %v1458_v9 = vsel %vm419_vm1, %v1448_v40, %v1453_v57 }
 0xaed   :  { %v1464_v16 = vmul.bf16 %v2889_v46, %v1458_v9  ;;  %v1465_v24 = vmul.bf16 %v2890_v7, %v1458_v9  ;;  %v1474_v9 = vld [vmem:[%s4087_s2 + $0x30] sm:$0xff]  ;;  %v1475_v7 = vld [vmem:[%s4087_s2 + $0x38] sm:$0xff] }
 0xaef   :  { %1496 = vmatprep.subr.bf16.mxu0 %v1465_v24 }
 0xaf0   :  { %1497 = vmatpush1.bf16.msra.mxu0 %v1464_v16 }
 0xaf3   :  { %v1455_v38 = vpop.permute.xlu0 %1454 }
 0xaf4   :  { %v1462_v18 = vsel %vm419_vm1, %v1449_v60, %v1455_v38 }
 0xaf5   :  { %v1466_v17 = vmul.bf16 %v2891_v23, %v1462_v18  ;;  %v1467_v37 = vmul.bf16 %v2892_v11, %v1462_v18 }
 0xaf7   :  { %1498 = vmatprep.subr.bf16.mxu0 %v1467_v37  ;;  %v1698_v56 = vpop.permute.xlu0 %1697 }
 0xaf8   :  { %1499 = vmatpush1.bf16.msra.mxu0 %v1466_v17  ;;  %v1738_v28 = vsel %vm109_vm0, %v1698_v56, %v3339_v30  ;;  %v1476_v56 = vld [vmem:[%s4087_s2 + $0x40] sm:$0xff] }
 0xaf9   :  { %2544 = vmatprep.subr.bf16.mxu1 %v1738_v28  ;;  %v1477_v28 = vld [vmem:[%s4087_s2 + $0x48] sm:$0xff] }
 0xafb   :  { %2457 = vmatmul.mubr.msk.bf16.vlgmr.msra.gmra.mrb[24].mxu0 %vm109_vm0, %v3661_v49  ;;  %v1682_v12 = vpop.permute.xlu0 %1681 }
 0xafc   :  { %v1714_v44 = vsel %vm109_vm0, %v1682_v12, %v3343_v31  ;;  %1538 = vmatprep.mubr.bf16.mxu0 %v4114_v52  ;;  %v1478_v12 = vld [vmem:[%s4087_s2 + $0x50] sm:$0xff] }
 0xafd   :  { %2545 = vmatpush3.bf16.msra.mxu1 %v1714_v44 }
 0xafe   :  { %2546 = vmatprep.subr.bf16.mxu1 %v1741_v22 }
 0xaff   :  { %v1684_v3 = vpop.permute.xlu0 %1683 }
 0xb00   :  { %v1717_v30 = vsel %vm109_vm0, %v1684_v3, %v3353_v41  ;;  %v1479_v3 = vld [vmem:[%s4087_s2 + $0x58] sm:$0xff] }
 0xb01   :  { %2547 = vmatpush3.bf16.msra.mxu1 %v1717_v30 }
 0xb03   :  { %2458 = vmatmul.mubr.msk.bf16.gmra.mrb[28].mxu0 %vm109_vm0, %v3659_v54  ;;  %v1702_v49 = vpop.permute.xlu0 %1701 }
 0xb04   :  { %v1744_v1 = vsel %vm109_vm0, %v1702_v49, %v3347_v35  ;;  %1548 = vmatprep.mubr.bf16.mxu0 %v4114_v52  ;;  %v1723_v35 = vsel %vm109_vm0, %v1688_v34, %v3359_v21 }
 0xb05   :  { %2548 = vmatprep.subr.bf16.mxu1 %v1744_v1 }
 0xb07   :  { %v1686_v31 = vpop.permute.xlu0 %1685 }
 0xb08   :  { %v1720_v36 = vsel %vm109_vm0, %v1686_v31, %v3363_v47 }
 0xb09   :  { %2549 = vmatpush3.bf16.msra.mxu1 %v1720_v36 }
 0xb0b   :  { %2459 = vmatmul.mubr.msk.bf16.gmra.mrb[32].mxu0 %vm109_vm0, %v3668_v51  ;;  %v1704_v41 = vpop.permute.xlu0 %1703 }
 0xb0c   :  { %v1747_v54 = vsel %vm109_vm0, %v1704_v41, %v3355_v42  ;;  %1558 = vmatprep.mubr.bf16.mxu0 %v4114_v52  ;;  %v1753_v52 = vsel %vm109_vm0, %v1708_v27, %v3373_v55  ;;  %v1468_v55 = vld [vmem:[%s4087_s2] sm:$0xff] }
 0xb0d   :  { %2550 = vmatprep.subr.bf16.mxu1 %v1747_v54  ;;  %v1480_v54 = vld [vmem:[%s4087_s2 + $0x60] sm:$0xff] }
 0xb0e   :  { %2551 = vmatpush3.bf16.msra.mxu1 %v1723_v35  ;;  %v1481_v35 = vld [vmem:[%s4087_s2 + $0x68] sm:$0xff] }
 0xb0f   :  { %v1706_v13 = vpop.permute.xlu0 %1705 }
 0xb10   :  { %v1750_v47 = vsel %vm109_vm0, %v1706_v13, %v3365_v50 }
 0xb11   :  { %2552 = vmatprep.subr.bf16.mxu1 %v1750_v47  ;;  %v1482_v47 = vld [vmem:[%s4087_s2 + $0x70] sm:$0xff] }
 0xb13   :  { %2460 = vmatmul.mubr.msk.bf16.gmra.mrb[36].mxu0 %vm109_vm0, %v3666_v43  ;;  %v1690_v51 = vpop.permute.xlu0 %1689 }
 0xb14   :  { %v1726_v42 = vsel %vm109_vm0, %v1690_v51, %v3377_v39  ;;  %v1469_v39 = vld [vmem:[%s4087_s2 + $0x8] sm:$0xff] }
 0xb15   :  { %2553 = vmatpush3.bf16.msra.mxu1 %v1726_v42  ;;  %v1483_v42 = vld [vmem:[%s4087_s2 + $0x78] sm:$0xff] }
 0xb16   :  { %2554 = vmatprep.subr.bf16.mxu1 %v1753_v52 }
 0xb17   :  { %v1692_v21 = vpop.permute.xlu0 %1691 }
 0xb18   :  { %v1729_v40 = vsel %vm109_vm0, %v1692_v21, %v3381_v61 }
 0xb19   :  { %2555 = vmatpush3.bf16.msra.mxu1 %v1729_v40 }
 0xb1b   :  { %v1710_v50 = vpop.permute.xlu0 %1709 }
 0xb1c   :  { %v1756_v20 = vsel %vm109_vm0, %v1710_v50, %v3385_v4  ;;  %v1470_v4 = vld [vmem:[%s4087_s2 + $0x10] sm:$0xff] }
 0xb1d   :  { %2556 = vmatprep.subr.bf16.mxu1 %v1756_v20 }
 0xb1f   :  { %v1694_v32 = vpop.permute.xlu0 %1693 }
 0xb20   :  { %v1732_v60 = vsel %vm109_vm0, %v1694_v32, %v3391_v19  ;;  %v1471_v19 = vld [vmem:[%s4087_s2 + $0x18] sm:$0xff] }
 0xb21   :  { %2557 = vmatpush3.bf16.msra.mxu1 %v1732_v60 }
 0xbce   :  { %v1530_v61 = vpop.f32.mrb[24].mxu0 }
 0xbcf   :  { %v3776_v6 = vadd.f32 %v1530_v61, %v1468_v55  ;;  %v1532_v14 = vpop.f32.mrb[25].mxu0  ;;  %v1664_v55 = vmul.bf16 %v3666_v43, %v3330_v25 }
 0xbd0   :  { %v3784_v53 = vadd.f32 %v1532_v14, %v1469_v39  ;;  %v1534_v58 = vpop.f32.mrb[26].mxu0  ;;  %v1656_v39 = vmul.bf16 %v3666_v43, %v3337_v26 }
 0xbd1   :  { %v1536_v48 = vpop.f32.mrb[27].mxu0  ;;  %v3788_v62 = vadd.f32 %v1534_v58, %v1470_v4 }
 0xbd2   :  { %v1569_v59 = vmax.f32 %v3776_v6, %v3784_v53  ;;  %v1537_v63 = vadd.f32 %v1536_v48, %v1471_v19 }
 0xbd4   :  { %1570 = vmax.xlane.f32.xlu0 %v1569_v59  ;;  %v1572_v8 = vmax.f32 %v3788_v62, %v1537_v63 }
 0xbd6   :  { %v1540_v57 = vpop.f32.mrb[28].mxu0 }
 0xbd7   :  { %v3800_v46 = vadd.f32 %v1540_v57, %v1472_v0  ;;  %v1542_v16 = vpop.f32.mrb[29].mxu0 }
 0xbd8   :  { %v3805_v24 = vadd.f32 %v1542_v16, %v1473_v5  ;;  %v1544_v38 = vpop.f32.mrb[30].mxu0  ;;  %1573 = vmax.xlane.f32.xlu0 %v1572_v8 }
 0xbd9   :  { %v3807_v18 = vadd.f32 %v1544_v38, %v1474_v9  ;;  %v1546_v23 = vpop.f32.mrb[31].mxu0 }
 0xbda   :  { %v1575_v17 = vmax.f32 %v3800_v46, %v3805_v24  ;;  %v1547_v11 = vadd.f32 %v1546_v23, %v1475_v7 }
 0xbdc   :  { %v1578_v37 = vmax.f32 %v3807_v18, %v1547_v11  ;;  %1576 = vmax.xlane.f32.xlu0 %v1575_v17 }
 0xbde   :  { %v1550_v29 = vpop.f32.mrb[32].mxu0  ;;  %1579 = vmax.xlane.f32.xlu1 %v1578_v37 }
 0xbdf   :  { %v3821_v44 = vadd.f32 %v1550_v29, %v1476_v56  ;;  %v1552_v22 = vpop.f32.mrb[33].mxu0 }
 0xbe0   :  { %v3826_v30 = vadd.f32 %v1552_v22, %v1477_v28  ;;  %v1554_v49 = vpop.f32.mrb[34].mxu0 }
 0xbe1   :  { %v3828_v1 = vadd.f32 %v1554_v49, %v1478_v12  ;;  %v1556_v31 = vpop.f32.mrb[35].mxu0 }
 0xbe2   :  { %v1581_v36 = vmax.f32 %v3821_v44, %v3826_v30  ;;  %v1557_v34 = vadd.f32 %v1556_v31, %v1479_v3 }
 0xbe4   :  { %v1584_v41 = vmax.f32 %v3828_v1, %v1557_v34  ;;  %1582 = vmax.xlane.f32.xlu0 %v1581_v36 }
 0xbe6   :  { %v1560_v13 = vpop.f32.mrb[36].mxu0  ;;  %1585 = vmax.xlane.f32.xlu1 %v1584_v41 }
 0xbe7   :  { %v3842_v27 = vadd.f32 %v1560_v13, %v1480_v54  ;;  %v1562_v51 = vpop.f32.mrb[37].mxu0 }
 0xbe8   :  { %v3847_v52 = vadd.f32 %v1562_v51, %v1481_v35  ;;  %v1564_v21 = vpop.f32.mrb[38].mxu0 }
 0xbe9   :  { %v3849_v40 = vadd.f32 %v1564_v21, %v1482_v47  ;;  %v1566_v50 = vpop.f32.mrb[39].mxu0 }
 0xbea   :  { %v1587_v20 = vmax.f32 %v3842_v27, %v3847_v52  ;;  %v3853_v32 = vadd.f32 %v1566_v50, %v1483_v42 }
 0xbec   :  { %v1590_v60 = vmax.f32 %v3849_v40, %v3853_v32  ;;  %1588 = vmax.xlane.f32.xlu0 %v1587_v20 }
 0xbee   :  { %1591 = vmax.xlane.f32.xlu1 %v1590_v60 }
 0xbff   :  { %1711 = vrot.lane.b32.xlu1 %v1664_v55, %s2894_s5 }
 0xc02   :  { %1695 = vrot.lane.b32.xlu0 %v1656_v39, %s2894_s5 }
 0xc61   :  { %v1571_v61 = vpop.xlane.xlu0 %1570 }
 0xc62   :  { %v1594_v14 = vsub.f32 %v3784_v53, %v1571_v61  ;;  %v1593_v8 = vsub.f32 %v3776_v6, %v1571_v61 }
 0xc64   :  { %v1611_v19 = vmul.f32 1.442695, %v1594_v14  ;;  %v1609_v16 = vmul.f32 1.442695, %v1593_v8 }
 0xc65   :  { %v1574_v4 = vpop.xlane.xlu0 %1573 }
 0xc66   :  { %v1596_v58 = vsub.f32 %v1537_v63, %v1574_v4  ;;  %2801 = vpow2.f32 %v1611_v19  ;;  %v1595_v0 = vsub.f32 %v3788_v62, %v1574_v4 }
 0xc68   :  { %v1615_v48 = vmul.f32 1.442695, %v1596_v58  ;;  %v1613_v43 = vmul.f32 1.442695, %v1595_v0 }
 0xc69   :  { %v1577_v25 = vpop.xlane.xlu0 %1576 }
 0xc6a   :  { %2803 = vpow2.f32 %v1615_v48  ;;  %v1598_v26 = vsub.f32 %v3805_v24, %v1577_v25 }
 0xc6b   :  { %v1580_v59 = vpop.xlane.xlu1 %1579  ;;  %2805 = vpow2.f32 %v1613_v43 }
 0xc6c   :  { %v1600_v5 = vsub.f32 %v1547_v11, %v1580_v59  ;;  %v1619_v38 = vmul.f32 1.442695, %v1598_v26  ;;  %v1599_v23 = vsub.f32 %v3807_v18, %v1580_v59  ;;  %v1597_v11 = vsub.f32 %v3800_v46, %v1577_v25 }
 0xc6e   :  { %v1623_v57 = vmul.f32 1.442695, %v1600_v5  ;;  %v1621_v37 = vmul.f32 1.442695, %v1599_v23  ;;  %v1617_v29 = vmul.f32 1.442695, %v1597_v11 }
 0xc6f   :  { %v2714_v23 = vld [vmem:[%s4088_s11 + $0x8] sm:$0xff]  }
 0xc70   :  { %v2802_v9 = vpop.eup %2801  ;;  %2807 = vpow2.f32 %v1623_v57  ;;  %v2713_v57 = vld [vmem:[%s4088_s11] sm:$0xff]  }
 0xc71   :  { %v1583_v63 = vpop.xlane.xlu0 %1582  ;;  %2809 = vpow2.f32 %v1609_v16  ;;  %2640 = vmatprep.subr.bf16.mxu0 %v2713_v57 }
 0xc72   :  { %2811 = vpow2.f32 %v1619_v38  ;;  %v1602_v6 = vsub.f32 %v3826_v30, %v1583_v63  ;;  %v1601_v46 = vsub.f32 %v3821_v44, %v1583_v63  ;;  %2641 = vmatpush3.bf16.msra.mxu0 %v2713_v57  ;;  %v4120_v57 = vld [vmem:[#allocation2_spill] sm:$0xff] }
 0xc73   :  { %v1586_v53 = vpop.xlane.xlu1 %1585  ;;  %2813 = vpow2.f32 %v1621_v37  ;;  %2642 = vmatprep.subr.bf16.mxu0 %v2714_v23 }
 0xc74   :  { %v2804_v7 = vpop.eup %2803  ;;  %v1604_v62 = vsub.f32 %v1557_v34, %v1586_v53  ;;  %v1627_v12 = vmul.f32 1.442695, %v1602_v6  ;;  %v1603_v22 = vsub.f32 %v3828_v1, %v1586_v53  ;;  %v1625_v51 = vmul.f32 1.442695, %v1601_v46 }
 0xc75   :  { %v1642_v17 = vpack.c.bf16 %v2804_v7, %v2802_v9  ;;  %v2806_v31 = vpop.eup %2805 }
 0xc76   :  { %v1631_v56 = vmul.f32 1.442695, %v1604_v62  ;;  %v1629_v54 = vmul.f32 1.442695, %v1603_v22  ;;  %2643 = vmatpush3.bf16.msra.mxu0 %v2714_v23 }
 0xc77   :  { %1793 = vmatprep.mubr.bf16.mxu1 %v1642_v17 }
 0xc78   :  { %2815 = vpow2.f32 %v1631_v56 }
 0xc79   :  { %v1589_v24 = vpop.xlane.xlu0 %1588  ;;  %2817 = vpow2.f32 %v1617_v29 }
 0xc7a   :  { %v2808_v36 = vpop.eup %2807  ;;  %2819 = vpow2.f32 %v1627_v12  ;;  %v1606_v34 = vsub.f32 %v3847_v52, %v1589_v24 }
 0xc7b   :  { %v1592_v28 = vpop.xlane.xlu1 %1591  ;;  %v2810_v1 = vpop.eup %2809  ;;  %2821 = vpow2.f32 %v1629_v54 }
 0xc7c   :  { %v1608_v3 = vsub.f32 %v3853_v32, %v1592_v28  ;;  %v2812_v35 = vpop.eup %2811  ;;  %v1641_v47 = vpack.c.bf16 %v2806_v31, %v2810_v1  ;;  %v1635_v44 = vmul.f32 1.442695, %v1606_v34 }
 0xc7d   :  { %v1696_v18 = vpop.permute.xlu0 %1695  ;;  %v1644_v42 = vpack.c.bf16 %v2808_v36, %v2812_v35  ;;  %v2814_v52 = vpop.eup %2813 }
 0xc7e   :  { %v1735_v41 = vsel %vm109_vm0, %v1696_v18, %v3497_v15  ;;  %v1639_v13 = vmul.f32 1.442695, %v1608_v3  ;;  %v1605_v15 = vsub.f32 %v3842_v27, %v1589_v24 }
 0xc7f   :  { %v1712_v49 = vpop.permute.xlu1 %1711 }
 0xc80   :  { %v1759_v30 = vsel %vm109_vm0, %v1712_v49, %v3395_v2  ;;  %v1607_v2 = vsub.f32 %v3849_v40, %v1592_v28  ;;  %2823 = vpow2.f32 %v1639_v13  ;;  %v1633_v55 = vmul.f32 1.442695, %v1605_v15 }
 0xc81   :  { %2558 = vmatprep.subr.bf16.mxu1 %v1759_v30  ;;  %2825 = vpow2.f32 %v1625_v51 }
 0xc82   :  { %2559 = vmatpush3.bf16.msra.mxu1 %v1735_v41  ;;  %v2816_v21 = vpop.eup %2815  ;;  %2827 = vpow2.f32 %v1635_v44  ;;  %v1637_v20 = vmul.f32 1.442695, %v1607_v2 }
 0xc83   :  { %v2818_v50 = vpop.eup %2817 }
 0xc84   :  { %v2820_v32 = vpop.eup %2819  ;;  %v1643_v60 = vpack.c.bf16 %v2814_v52, %v2818_v50  ;;  %2829 = vpow2.f32 %v1637_v20 }
 0xc85   :  { %1794 = vmatmul.mubr.bf16.vlgmr.msra.gmra.mrb[32].mxu1 %v1641_v47  ;;  %v1646_v39 = vpack.c.bf16 %v2816_v21, %v2820_v32  ;;  %v2822_v61 = vpop.eup %2821  ;;  %2831 = vpow2.f32 %v1633_v55 }
 0xc86   :  { %1801 = vmatprep.mubr.bf16.mxu1 %v1644_v42 }
 0xc8a   :  { %v2824_v40 = vpop.eup %2823 }
 0xc8b   :  { %v2826_v14 = vpop.eup %2825 }
 0xc8c   :  { %v2828_v4 = vpop.eup %2827  ;;  %v1645_v19 = vpack.c.bf16 %v2822_v61, %v2826_v14  ;;  %v2461_v14 = vld [vmem:[%s4089_s12] ss:$0 sm:$0xff] }
 0xc8d   :  { %1802 = vmatmul.mubr.bf16.gmra.mrb[36].mxu1 %v1643_v60  ;;  %v1648_v58 = vpack.c.bf16 %v2824_v40, %v2828_v4 }
 0xc8e   :  { %1809 = vmatprep.mubr.bf16.mxu1 %v1646_v39  ;;  %v2830_v27 = vpop.eup %2829 }
 0xc8f   :  { %v2832_v48 = vpop.eup %2831 }
 0xc90   :  { %v1647_v59 = vpack.c.bf16 %v2830_v27, %v2832_v48 }
 0xc95   :  { %1810 = vmatmul.mubr.bf16.gmra.mrb[40].mxu1 %v1645_v19 }
 0xc96   :  { %1817 = vmatprep.mubr.bf16.mxu1 %v1648_v58 }
 0xc9d   :  { %1818 = vmatmul.mubr.bf16.gmra.mrb[44].mxu1 %v1647_v59 }
 0xd58   :  { %v2560_v0 = vpop.f32.mrb[32].mxu1 }
 0xd59   :  { %v2561_v25 = vpop.f32.mrb[33].mxu1 }
 0xd5a   :  { %v2562_v5 = vadd.f32 %v2561_v25, %v2560_v0  ;;  %v2563_v8 = vpop.f32.mrb[34].mxu1 }
 0xd5b   :  { %v2564_v26 = vpop.f32.mrb[35].mxu1 }
 0xd5c   :  { %2833 = vrcp.f32 %v2562_v5  ;;  %v2565_v43 = vadd.f32 %v2564_v26, %v2563_v8 }
 0xd5e   :  { %2835 = vrcp.f32 %v2565_v43 }
 0xd60   :  { %v2566_v9 = vpop.f32.mrb[36].mxu1 }
 0xd61   :  { %v2567_v16 = vpop.f32.mrb[37].mxu1 }
 0xd62   :  { %v2568_v53 = vadd.f32 %v2567_v16, %v2566_v9  ;;  %v2569_v7 = vpop.f32.mrb[38].mxu1 }
 0xd63   :  { %v2570_v38 = vpop.f32.mrb[39].mxu1 }
 0xd64   :  { %2837 = vrcp.f32 %v2568_v53  ;;  %v2571_v63 = vadd.f32 %v2570_v38, %v2569_v7 }
 0xd66   :  { %v2834_v17 = vpop.eup %2833  ;;  %2839 = vrcp.f32 %v2571_v63 }
 0xd67   :  { %1842 = vrot.lane.b32.xlu1 %v2834_v17, %s2893_s30  ;;  %v4121_v17 = vld [vmem:[#allocation3_spill] sm:$0xff] }
 0xd68   :  { %v2836_v62 = vpop.eup %2835  ;;  %v2572_v11 = vpop.f32.mrb[40].mxu1 }
 0xd69   :  { %v2573_v6 = vpop.f32.mrb[41].mxu1  ;;  %1844 = vrot.lane.b32.xlu0 %v2836_v62, %s2893_s30 }
 0xd6a   :  { %v2574_v24 = vadd.f32 %v2573_v6, %v2572_v11  ;;  %v2575_v37 = vpop.f32.mrb[42].mxu1 }
 0xd6b   :  { %v2576_v56 = vpop.f32.mrb[43].mxu1 }
 0xd6c   :  { %2841 = vrcp.f32 %v2574_v24  ;;  %v2577_v28 = vadd.f32 %v2576_v56, %v2575_v37  ;;  %v4123_v56 = vld [vmem:[#allocation5_spill] sm:$0xff] }
 0xd6e   :  { %v2838_v29 = vpop.eup %2837  ;;  %2843 = vrcp.f32 %v2577_v28 }
 0xd6f   :  { %1846 = vrot.lane.b32.xlu1 %v2838_v29, %s2893_s30 }
 0xd70   :  { %v2840_v12 = vpop.eup %2839  ;;  %v2578_v22 = vpop.f32.mrb[44].mxu1 }
 0xd71   :  { %v2579_v18 = vpop.f32.mrb[45].mxu1  ;;  %1848 = vrot.lane.b32.xlu0 %v2840_v12, %s2893_s30  ;;  %v4124_v12 = vld [vmem:[#allocation6_spill] sm:$0xff] }
 0xd72   :  { %v2580_v3 = vadd.f32 %v2579_v18, %v2578_v22  ;;  %v2581_v49 = vpop.f32.mrb[46].mxu1 }
 0xd73   :  { %v2582_v31 = vpop.f32.mrb[47].mxu1 }
 0xd74   :  { %2845 = vrcp.f32 %v2580_v3  ;;  %v2583_v46 = vadd.f32 %v2582_v31, %v2581_v49 }
 0xd76   :  { %v2842_v30 = vpop.eup %2841  ;;  %2847 = vrcp.f32 %v2583_v46 }
 0xd77   :  { %1850 = vrot.lane.b32.xlu1 %v2842_v30, %s2893_s30 }
 0xd78   :  { %v2844_v36 = vpop.eup %2843 }
 0xd79   :  { %1852 = vrot.lane.b32.xlu0 %v2844_v36, %s2893_s30 }
 0xd7e   :  { %v2846_v34 = vpop.eup %2845 }
 0xd7f   :  { %1854 = vrot.lane.b32.xlu1 %v2846_v34, %s2893_s30 }
 0xd80   :  { %v2848_v41 = vpop.eup %2847 }
 0xd81   :  { %1856 = vrot.lane.b32.xlu0 %v2848_v41, %s2893_s30 }
 0xdd9   :  { %v1843_v1 = vpop.permute.xlu1 %1842 }
 0xdda   :  { %v1866_v35 = vmul.f32 %v2562_v5, %v1843_v1 }
 0xddb   :  { %v1845_v54 = vpop.permute.xlu0 %1844 }
 0xddc   :  { %v1867_v13 = vmul.f32 %v2565_v43, %v1845_v54 }
 0xdde   :  { %v1874_v47 = vpack.c.bf16 %v1867_v13, %v1866_v35 }
 0xde0   :  { %2644 = vmatprep.mubr.msk.bf16.mxu0 %vm109_vm0, %v1874_v47 }
 0xde1   :  { %v1847_v51 = vpop.permute.xlu1 %1846 }
 0xde2   :  { %v1868_v44 = vmul.f32 %v2568_v53, %v1847_v51 }
 0xde3   :  { %v1849_v42 = vpop.permute.xlu0 %1848 }
 0xde4   :  { %v1869_v2 = vmul.f32 %v2571_v63, %v1849_v42 }
 0xde6   :  { %v1875_v52 = vpack.c.bf16 %v1869_v2, %v1868_v44 }
 0xde8   :  { %2645 = vmatmul.mubr.msk.bf16.vlgmr.msra.gmra.mrb[40].mxu0 %vm109_vm0, %v1875_v52 }
 0xde9   :  { %v1851_v15 = vpop.permute.xlu1 %1850 }
 0xdea   :  { %v1870_v50 = vmul.f32 %v2574_v24, %v1851_v15  ;;  %v4122_v24 = vld [vmem:[#allocation4_spill] sm:$0xff] }
 0xdeb   :  { %v1853_v21 = vpop.permute.xlu0 %1852 }
 0xdec   :  { %v1871_v20 = vmul.f32 %v2577_v28, %v1853_v21 }
 0xdee   :  { %v1876_v32 = vpack.c.bf16 %v1871_v20, %v1870_v50 }
 0xdf0   :  { %2648 = vmatprep.mubr.msk.bf16.mxu0 %vm109_vm0, %v1876_v32 }
 0xdf1   :  { %v1855_v60 = vpop.permute.xlu1 %1854 }
 0xdf2   :  { %v1872_v39 = vmul.f32 %v2580_v3, %v1855_v60 }
 0xdf3   :  { %v1857_v55 = vpop.permute.xlu0 %1856 }
 0xdf4   :  { %v1873_v61 = vmul.f32 %v2583_v46, %v1857_v55 }
 0xdf6   :  { %v1877_v40 = vpack.c.bf16 %v1873_v61, %v1872_v39 }
 0xdf8   :  { %2649 = vmatmul.mubr.msk.bf16.gmra.mrb[44].mxu0 %vm109_vm0, %v1877_v40 }
 0xebb   :  { %v2646_v4 = vpop.f32.mrb[40].mxu0 }
 0xebc   :  { %v1947_v19 = vpop.f32.mrb[41].mxu0  ;;  %v1956_v0 = vadd.f32 %v2646_v4, %v2461_v14 }
 0xebd   :  { %v1948_v58 = vadd.f32 %v2461_v14, %v1947_v19  ;;  %v2647_v27 = vpop.f32.mrb[42].mxu0 }
 0xebe   :  { %v1959_v48 = vadd.f32 %v2647_v27, %v2461_v14  ;;  %v1950_v59 = vpop.f32.mrb[43].mxu0  ;;  %v3913_v9 = vadd.f32 %v1956_v0, %v4120_v57 }
 0xebf   :  { %v3902_v25 = vadd.f32 %v1948_v58, %v3529_v10  ;;  %v1951_v5 = vadd.f32 %v2461_v14, %v1950_v59 }
 0xec0   :  { %v3905_v8 = vadd.f32 %v1959_v48, %v3534_v45  ;;  %v1994_v45 = vsel %vm109_vm0, %v3913_v9, 0.0 }
 0xec1   :  { %v3908_v26 = vadd.f32 %v1951_v5, %v3539_v33  ;;  %v1988_v43 = vsel %vm109_vm0, %v3902_v25, 0.0 }
 0xec2   :  { %1989 = vadd.xlane.f32.xlu1 %v1988_v43  ;;  %v1997_v10 = vsel %vm109_vm0, %v3905_v8, 0.0 }
 0xec3   :  { %v1991_v16 = vsel %vm109_vm0, %v3908_v26, 0.0 }
 0xec4   :  { %1992 = vadd.xlane.f32.xlu0 %v1991_v16 }
 0xec6   :  { %1998 = vadd.xlane.f32.xlu1 %v1997_v10 }
 0xec8   :  { %1995 = vadd.xlane.f32.xlu0 %v1994_v45 }
 0xecb   :  { %v2650_v33 = vpop.f32.mrb[44].mxu0 }
 0xecc   :  { %v1963_v53 = vpop.f32.mrb[45].mxu0  ;;  %v1972_v7 = vadd.f32 %v2650_v33, %v2461_v14  ;;  %v2715_v33 = vld [vmem:[%s4090_s15] sm:$0xff]  }
 0xecd   :  { %v1964_v38 = vadd.f32 %v2461_v14, %v1963_v53  ;;  %v2651_v63 = vpop.f32.mrb[46].mxu0  ;;  %2652 = vmatprep.subr.bf16.mxu0 %v2715_v33  ;;  %v2716_v53 = vld [vmem:[%s4090_s15 + $0x8] sm:$0xff]  }
 0xece   :  { %v1966_v23 = vpop.f32.mrb[47].mxu0  ;;  %v1975_v11 = vadd.f32 %v2651_v63, %v2461_v14  ;;  %v3925_v37 = vadd.f32 %v1972_v7, %v4122_v24  ;;  %2653 = vmatpush3.bf16.msra.mxu0 %v2715_v33 }
 0xecf   :  { %v3922_v62 = vadd.f32 %v1964_v38, %v4121_v17  ;;  %v1967_v6 = vadd.f32 %v2461_v14, %v1966_v23  ;;  %2654 = vmatprep.subr.bf16.mxu0 %v2716_v53 }
 0xed0   :  { %v3933_v22 = vadd.f32 %v1975_v11, %v4124_v12  ;;  %v2006_v3 = vsel %vm109_vm0, %v3925_v37, 0.0 }
 0xed1   :  { %v3928_v28 = vadd.f32 %v1967_v6, %v4123_v56  ;;  %v2000_v29 = vsel %vm109_vm0, %v3922_v62, 0.0 }
 0xed2   :  { %2001 = vadd.xlane.f32.xlu0 %v2000_v29  ;;  %v2009_v49 = vsel %vm109_vm0, %v3933_v22, 0.0  ;;  %2655 = vmatpush3.bf16.msra.mxu0 %v2716_v53 }
 0xed3   :  { %v2003_v18 = vsel %vm109_vm0, %v3928_v28, 0.0 }
 0xed4   :  { %2004 = vadd.xlane.f32.xlu1 %v2003_v18 }
 0xed6   :  { %2007 = vadd.xlane.f32.xlu0 %v2006_v3 }
 0xed8   :  { %2010 = vadd.xlane.f32.xlu1 %v2009_v49  ;;  %v2468_v49 = vld [vmem:[%s4112_s14 + $0x2] ss:$0 sm:$0xff] }
 0xf4f   :  { %v1990_v31 = vpop.xlane.xlu1 %1989 }
 0xf50   :  { %v2012_v46 = vmul.f32 0.03125, %v1990_v31 }
 0xf51   :  { %v1993_v30 = vpop.xlane.xlu0 %1992 }
 0xf52   :  { %v3942_v36 = vsub.f32 %v3902_v25, %v2012_v46  ;;  %v2013_v34 = vmul.f32 0.03125, %v1993_v30 }
 0xf53   :  { %v1999_v41 = vpop.xlane.xlu1 %1998 }
 0xf54   :  { %v3945_v1 = vsub.f32 %v3908_v26, %v2013_v34  ;;  %v2015_v54 = vmul.f32 0.03125, %v1999_v41  ;;  %v2028_v35 = vmul.f32 %v3942_v36, %v3942_v36  ;;  %v2469_v34 = vld [vmem:[%s4113_s28 + $0x2] ss:$0 sm:$0xff] }
 0xf55   :  { %v1996_v13 = vpop.xlane.xlu0 %1995 }
 0xf56   :  { %v3950_v47 = vsub.f32 %v3905_v8, %v2015_v54  ;;  %v2014_v51 = vmul.f32 0.03125, %v1996_v13  ;;  %v2036_v42 = vsel %vm109_vm0, %v2028_v35, 0.0  ;;  %v2029_v44 = vmul.f32 %v3945_v1, %v3945_v1 }
 0xf57   :  { %2037 = vadd.xlane.f32.xlu0 %v2036_v42 }
 0xf58   :  { %v3956_v2 = vsub.f32 %v3913_v9, %v2014_v51  ;;  %v2039_v52 = vsel %vm109_vm0, %v2029_v44, 0.0  ;;  %v2031_v15 = vmul.f32 %v3950_v47, %v3950_v47 }
 0xf59   :  { %2040 = vadd.xlane.f32.xlu1 %v2039_v52 }
 0xf5a   :  { %v2030_v21 = vmul.f32 %v3956_v2, %v3956_v2  ;;  %v2045_v20 = vsel %vm109_vm0, %v2031_v15, 0.0 }
 0xf5c   :  { %v2042_v50 = vsel %vm109_vm0, %v2030_v21, 0.0 }
 0xf5d   :  { %2043 = vadd.xlane.f32.xlu0 %v2042_v50  ;;  %2046 = vadd.xlane.f32.xlu1 %v2045_v20 }
 0xf5f   :  { %v2002_v32 = vpop.xlane.xlu0 %2001 }
 0xf60   :  { %v2016_v60 = vmul.f32 0.03125, %v2002_v32 }
 0xf61   :  { %v2005_v55 = vpop.xlane.xlu1 %2004 }
 0xf62   :  { %v3966_v39 = vsub.f32 %v3922_v62, %v2016_v60  ;;  %v2017_v61 = vmul.f32 0.03125, %v2005_v55 }
 0xf63   :  { %v2008_v40 = vpop.xlane.xlu0 %2007 }
 0xf64   :  { %v3969_v14 = vsub.f32 %v3928_v28, %v2017_v61  ;;  %v2018_v4 = vmul.f32 0.03125, %v2008_v40  ;;  %v2032_v19 = vmul.f32 %v3966_v39, %v3966_v39 }
 0xf65   :  { %v2011_v58 = vpop.xlane.xlu1 %2010 }
 0xf66   :  { %v3974_v27 = vsub.f32 %v3925_v37, %v2018_v4  ;;  %v2019_v48 = vmul.f32 0.03125, %v2011_v58  ;;  %v2048_v59 = vsel %vm109_vm0, %v2032_v19, 0.0  ;;  %v2033_v0 = vmul.f32 %v3969_v14, %v3969_v14 }
 0xf67   :  { %2049 = vadd.xlane.f32.xlu0 %v2048_v59 }
 0xf68   :  { %v3980_v5 = vsub.f32 %v3933_v22, %v2019_v48  ;;  %v2051_v43 = vsel %vm109_vm0, %v2033_v0, 0.0  ;;  %v2034_v57 = vmul.f32 %v3974_v27, %v3974_v27 }
 0xf69   :  { %2052 = vadd.xlane.f32.xlu1 %v2051_v43 }
 0xf6a   :  { %v2054_v16 = vsel %vm109_vm0, %v2034_v57, 0.0  ;;  %v2035_v10 = vmul.f32 %v3980_v5, %v3980_v5 }
 0xf6b   :  { %2055 = vadd.xlane.f32.xlu0 %v2054_v16 }
 0xf6c   :  { %v2057_v45 = vsel %vm109_vm0, %v2035_v10, 0.0 }
 0xf6d   :  { %2058 = vadd.xlane.f32.xlu1 %v2057_v45 }
 0xfe4   :  { %v2038_v7 = vpop.xlane.xlu0 %2037 }
 0xfe5   :  { %v2060_v38 = vmul.f32 0.03125, %v2038_v7 }
 0xfe6   :  { %v2041_v63 = vpop.xlane.xlu1 %2040 }
 0xfe7   :  { %v2068_v23 = vadd.f32 1e-12, %v2060_v38  ;;  %v2061_v17 = vmul.f32 0.03125, %v2041_v63 }
 0xfe9   :  { %2849 = vrsqrt.f32 %v2068_v23  ;;  %v2069_v11 = vadd.f32 1e-12, %v2061_v17 }
 0xfea   :  { %v2044_v6 = vpop.xlane.xlu0 %2043  ;;  %v2047_v24 = vpop.xlane.xlu1 %2046 }
 0xfeb   :  { %2851 = vrsqrt.f32 %v2069_v11  ;;  %v2062_v56 = vmul.f32 0.03125, %v2044_v6  ;;  %v2063_v29 = vmul.f32 0.03125, %v2047_v24 }
 0xfed   :  { %v2070_v12 = vadd.f32 1e-12, %v2062_v56  ;;  %v2071_v18 = vadd.f32 1e-12, %v2063_v29  ;;  %v2720_v29 = vld [vmem:[%s4091_s17 + $0x18] sm:$0xff]  }
 0xfef   :  { %2853 = vrsqrt.f32 %v2070_v12  ;;  %v2470_v12 = vld [vmem:[%s4092_s16] ss:$0 sm:$0xff] }
 0xff0   :  { %2855 = vrsqrt.f32 %v2071_v18 }
 0xff3   :  { %v2850_v3 = vpop.eup %2849 }
 0xff4   :  { %v2084_v31 = vmul.f32 %v2850_v3, %v3942_v36  ;;  %v2050_v46 = vpop.xlane.xlu0 %2049 }
 0xff5   :  { %v2852_v30 = vpop.eup %2851  ;;  %v2064_v41 = vmul.f32 0.03125, %v2050_v46 }
 0xff6   :  { %v2085_v54 = vmul.f32 %v2852_v30, %v3945_v1  ;;  %v2053_v35 = vpop.xlane.xlu1 %2052  ;;  %v2096_v13 = vmul.f32 %v2468_v49, %v2084_v31 }
 0xff7   :  { %v2072_v51 = vadd.f32 1e-12, %v2064_v41  ;;  %v2065_v42 = vmul.f32 0.03125, %v2053_v35 }
 0xff8   :  { %v2056_v44 = vpop.xlane.xlu0 %2055  ;;  %v2097_v52 = vmul.f32 %v2468_v49, %v2085_v54  ;;  %v2108_v15 = vadd.f32 %v2469_v34, %v2096_v13 }
 0xff9   :  { %v2854_v21 = vpop.eup %2853  ;;  %2857 = vrsqrt.f32 %v2072_v51  ;;  %v2073_v50 = vadd.f32 1e-12, %v2065_v42  ;;  %v2066_v36 = vmul.f32 0.03125, %v2056_v44 }
 0xffa   :  { %v2856_v20 = vpop.eup %2855  ;;  %v2086_v32 = vmul.f32 %v2854_v21, %v3956_v2  ;;  %v2059_v60 = vpop.xlane.xlu1 %2058  ;;  %v2109_v55 = vadd.f32 %v2469_v34, %v2097_v52 }
 0xffb   :  { %v2087_v61 = vmul.f32 %v2856_v20, %v3950_v47  ;;  %2859 = vrsqrt.f32 %v2073_v50  ;;  %v2074_v1 = vadd.f32 1e-12, %v2066_v36  ;;  %v2067_v40 = vmul.f32 0.03125, %v2059_v60 }
 0xffc   :  { %v2098_v4 = vmul.f32 %v2468_v49, %v2086_v32  ;;  %v2116_v19 = vpack.c.bf16 %v2109_v55, %v2108_v15 }
 0xffd   :  { %v2099_v58 = vmul.f32 %v2468_v49, %v2087_v61  ;;  %2861 = vrsqrt.f32 %v2074_v1  ;;  %v2075_v48 = vadd.f32 1e-12, %v2067_v40 }
 0xffe   :  { %v2110_v59 = vadd.f32 %v2469_v34, %v2098_v4  ;;  %2656 = vmatprep.mubr.msk.bf16.mxu0 %vm109_vm0, %v2116_v19 }
 0xfff   :  { %v2111_v0 = vadd.f32 %v2469_v34, %v2099_v58  ;;  %2863 = vrsqrt.f32 %v2075_v48 }
0x1001   :  { %v2117_v43 = vpack.c.bf16 %v2111_v0, %v2110_v59 }
0x1003   :  { %v2858_v57 = vpop.eup %2857  ;;  %2657 = vmatmul.mubr.msk.bf16.vlgmr.msra.gmra.mrb[48].mxu0 %vm109_vm0, %v2117_v43 }
0x1004   :  { %v2088_v2 = vmul.f32 %v2858_v57, %v3966_v39 }
0x1005   :  { %v2860_v47 = vpop.eup %2859 }
0x1006   :  { %v2089_v16 = vmul.f32 %v2860_v47, %v3969_v14  ;;  %v2100_v10 = vmul.f32 %v2468_v49, %v2088_v2  ;;  %v2717_v14 = vld [vmem:[%s4091_s17] sm:$0xff]  }
0x1007   :  { %v2862_v45 = vpop.eup %2861  ;;  %2664 = vmatprep.subr.bf16.mxu1 %v2717_v14 }
0x1008   :  { %v2090_v33 = vmul.f32 %v2862_v45, %v3974_v27  ;;  %v2101_v53 = vmul.f32 %v2468_v49, %v2089_v16  ;;  %v2112_v7 = vadd.f32 %v2469_v34, %v2100_v10  ;;  %2665 = vmatpush3.bf16.msra.mxu1 %v2717_v14  ;;  %v2718_v27 = vld [vmem:[%s4091_s17 + $0x8] sm:$0xff]  }
0x1009   :  { %v2864_v38 = vpop.eup %2863  ;;  %2666 = vmatprep.subr.bf16.mxu1 %v2718_v27 }
0x100a   :  { %v2091_v63 = vmul.f32 %v2864_v38, %v3980_v5  ;;  %v2113_v23 = vadd.f32 %v2469_v34, %v2101_v53  ;;  %v2102_v17 = vmul.f32 %v2468_v49, %v2090_v33  ;;  %v2719_v5 = vld [vmem:[%s4091_s17 + $0x10] sm:$0xff]  }
0x100c   :  { %v2118_v11 = vpack.c.bf16 %v2113_v23, %v2112_v7  ;;  %v2103_v6 = vmul.f32 %v2468_v49, %v2091_v63  ;;  %v2114_v24 = vadd.f32 %v2469_v34, %v2102_v17  ;;  %2667 = vmatpush3.bf16.msra.mxu1 %v2718_v27 }
0x100d   :  { %2668 = vmatprep.subr.bf16.mxu1 %v2719_v5 }
0x100e   :  { %2660 = vmatprep.mubr.msk.bf16.mxu0 %vm109_vm0, %v2118_v11  ;;  %v2115_v39 = vadd.f32 %v2469_v34, %v2103_v6 }
0x1010   :  { %v2119_v56 = vpack.c.bf16 %v2115_v39, %v2114_v24  ;;  %2669 = vmatpush3.bf16.msra.mxu1 %v2719_v5 }
0x1011   :  { %2670 = vmatprep.subr.bf16.mxu1 %v2720_v29 }
0x1012   :  { %2661 = vmatmul.mubr.msk.bf16.gmra.mrb[52].mxu0 %vm109_vm0, %v2119_v56 }
0x1014   :  { %2671 = vmatpush3.bf16.msra.mxu1 %v2720_v29 }
0x10d6   :  { %v2658_v18 = vpop.f32.mrb[48].mxu0 }
0x10d7   :  { %v2198_v3 = vadd.f32 %v2658_v18, %v2470_v12  ;;  %v2189_v49 = vpop.f32.mrb[49].mxu0 }
0x10d8   :  { %v2190_v31 = vadd.f32 %v2470_v12, %v2189_v49  ;;  %v2659_v46 = vpop.f32.mrb[50].mxu0 }
0x10d9   :  { %v2230_v30 = vmul.f32 0.70710677, %v2198_v3  ;;  %v2201_v34 = vadd.f32 %v2659_v46, %v2470_v12  ;;  %v2192_v41 = vpop.f32.mrb[51].mxu0  ;;  %v2222_v20 = vmul.f32 0.5, %v2198_v3 }
0x10da   :  { %v2228_v54 = vmul.f32 0.70710677, %v2190_v31  ;;  %v2193_v35 = vadd.f32 %v2470_v12, %v2192_v41  ;;  %v2220_v1 = vmul.f32 0.5, %v2190_v31 }
0x10db   :  { %2865 = verf.f32 %v2230_v30  ;;  %v2231_v13 = vmul.f32 0.70710677, %v2201_v34  ;;  %v2223_v40 = vmul.f32 0.5, %v2201_v34  ;;  %v2485_v30 = vld [vmem:[%s4093_s18] ss:$0 sm:$0xff] }
0x10dc   :  { %2867 = verf.f32 %v2228_v54  ;;  %v2229_v51 = vmul.f32 0.70710677, %v2193_v35  ;;  %v2221_v59 = vmul.f32 0.5, %v2193_v35 }
0x10dd   :  { %2869 = verf.f32 %v2231_v13 }
0x10de   :  { %2871 = verf.f32 %v2229_v51 }
0x10e5   :  { %v2866_v42 = vpop.eup %2865  ;;  %v2662_v44 = vpop.f32.mrb[52].mxu0 }
0x10e6   :  { %v2868_v52 = vpop.eup %2867  ;;  %v2246_v15 = vadd.f32 1.0, %v2866_v42  ;;  %v2214_v21 = vadd.f32 %v2662_v44, %v2470_v12  ;;  %v2205_v50 = vpop.f32.mrb[53].mxu0 }
0x10e7   :  { %v2870_v36 = vpop.eup %2869  ;;  %v2244_v32 = vadd.f32 1.0, %v2868_v52  ;;  %v2206_v60 = vadd.f32 %v2470_v12, %v2205_v50  ;;  %v2663_v55 = vpop.f32.mrb[54].mxu0 }
0x10e8   :  { %v2872_v61 = vpop.eup %2871  ;;  %v2247_v4 = vadd.f32 1.0, %v2870_v36  ;;  %v2234_v19 = vmul.f32 0.70710677, %v2214_v21  ;;  %v2208_v58 = vpop.f32.mrb[55].mxu0  ;;  %v2254_v48 = vmul.f32 %v2246_v15, %v2222_v20  ;;  %v2217_v2 = vadd.f32 %v2663_v55, %v2470_v12 }
0x10e9   :  { %v2245_v0 = vadd.f32 1.0, %v2872_v61  ;;  %v2232_v43 = vmul.f32 0.70710677, %v2206_v60  ;;  %v2209_v47 = vadd.f32 %v2470_v12, %v2208_v58  ;;  %v2252_v16 = vmul.f32 %v2244_v32, %v2220_v1 }
0x10ea   :  { %v2255_v57 = vmul.f32 %v2247_v4, %v2223_v40  ;;  %2873 = verf.f32 %v2234_v19  ;;  %v2235_v33 = vmul.f32 0.70710677, %v2217_v2  ;;  %v2226_v24 = vmul.f32 0.5, %v2214_v21 }
0x10eb   :  { %v2253_v10 = vmul.f32 %v2245_v0, %v2221_v59  ;;  %2875 = verf.f32 %v2232_v43  ;;  %v2233_v7 = vmul.f32 0.70710677, %v2209_v47  ;;  %v2227_v39 = vmul.f32 0.5, %v2217_v2 }
0x10ec   :  { %v2261_v45 = vpack.c.bf16 %v2255_v57, %v2254_v48  ;;  %2877 = verf.f32 %v2235_v33  ;;  %v2224_v14 = vmul.f32 0.5, %v2206_v60  ;;  %v2225_v27 = vmul.f32 0.5, %v2209_v47 }
0x10ed   :  { %v2260_v53 = vpack.c.bf16 %v2253_v10, %v2252_v16  ;;  %2879 = verf.f32 %v2233_v7 }
0x10ef   :  { %2672 = vmatprep.mubr.msk.bf16.mxu1 %vm419_vm1, %v2260_v53 }
0x10f0   :  { %2673 = vmatmul.mubr.msk.bf16.vlgmr.msra.gmra.mrb[48].mxu1 %vm419_vm1, %v2261_v45 }
0x10f4   :  { %v2874_v38 = vpop.eup %2873 }
0x10f5   :  { %v2876_v63 = vpop.eup %2875  ;;  %v2250_v23 = vadd.f32 1.0, %v2874_v38 }
0x10f6   :  { %v2878_v17 = vpop.eup %2877  ;;  %v2248_v11 = vadd.f32 1.0, %v2876_v63 }
0x10f7   :  { %v2880_v6 = vpop.eup %2879  ;;  %v2251_v56 = vadd.f32 1.0, %v2878_v17  ;;  %v2258_v29 = vmul.f32 %v2250_v23, %v2226_v24 }
0x10f8   :  { %v2249_v5 = vadd.f32 1.0, %v2880_v6  ;;  %v2256_v18 = vmul.f32 %v2248_v11, %v2224_v14 }
0x10f9   :  { %v2259_v12 = vmul.f32 %v2251_v56, %v2227_v39 }
0x10fa   :  { %v2257_v3 = vmul.f32 %v2249_v5, %v2225_v27 }
0x10fb   :  { %v2263_v49 = vpack.c.bf16 %v2259_v12, %v2258_v29 }
0x10fc   :  { %v2262_v31 = vpack.c.bf16 %v2257_v3, %v2256_v18 }
0x10fe   :  { %2676 = vmatprep.mubr.msk.bf16.mxu1 %vm419_vm1, %v2262_v31 }
0x10ff   :  { %2677 = vmatmul.mubr.msk.bf16.gmra.mrb[52].mxu1 %vm419_vm1, %v2263_v49 }
0x11c3   :  { %v2674_v46 = vpop.f32.mrb[48].mxu1 }
0x11c4   :  { %v2375_v34 = vadd.f32 %v2674_v46, %v3913_v9  ;;  %v2342_v41 = vpop.f32.mrb[49].mxu1 }
0x11c5   :  { %v2373_v54 = vadd.f32 %v2342_v41, %v3902_v25  ;;  %v2675_v35 = vpop.f32.mrb[50].mxu1 }
0x11c6   :  { %v2390_v13 = vadd.f32 %v2485_v30, %v2375_v34  ;;  %v2376_v51 = vadd.f32 %v2675_v35, %v3905_v8  ;;  %v2345_v42 = vpop.f32.mrb[51].mxu1 }
0x11c7   :  { %v2388_v44 = vadd.f32 %v2485_v30, %v2373_v54  ;;  %v2374_v52 = vadd.f32 %v2345_v42, %v3908_v26 }
0x11c8   :  { %2398 = vst.msk [vmem:[%s4094_s19 + $0x10] sm:$0xff] %vm109_vm0, %v2390_v13  ;;  %v2391_v15 = vadd.f32 %v2485_v30, %v2376_v51 }
0x11c9   :  { %2396 = vst.msk [vmem:[%s4094_s19] sm:$0xff] %vm109_vm0, %v2388_v44  ;;  %v2389_v25 = vadd.f32 %v2485_v30, %v2374_v52 }
0x11ca   :  { %2399 = vst.msk [vmem:[%s4094_s19 + $0x18] sm:$0xff] %vm109_vm0, %v2391_v15 }
0x11cb   :  { %2397 = vst.msk [vmem:[%s4094_s19 + $0x8] sm:$0xff] %vm109_vm0, %v2389_v25 }
0x11d2   :  { %v2678_v8 = vpop.f32.mrb[52].mxu1 }
0x11d3   :  { %v2379_v26 = vadd.f32 %v2678_v8, %v3925_v37  ;;  %v2358_v9 = vpop.f32.mrb[53].mxu1 }
0x11d4   :  { %v2377_v21 = vadd.f32 %v2358_v9, %v3922_v62  ;;  %v2679_v50 = vpop.f32.mrb[54].mxu1 }
0x11d5   :  { %v2394_v36 = vadd.f32 %v2485_v30, %v2379_v26  ;;  %v2380_v20 = vadd.f32 %v2679_v50, %v3933_v22  ;;  %v2361_v32 = vpop.f32.mrb[55].mxu1 }
0x11d6   :  { %v2392_v60 = vadd.f32 %v2485_v30, %v2377_v21  ;;  %v2378_v55 = vadd.f32 %v2361_v32, %v3928_v28 }
0x11d7   :  { %2402 = vst.msk [vmem:[%s4094_s19 + $0x30] sm:$0xff] %vm109_vm0, %v2394_v36  ;;  %v2395_v61 = vadd.f32 %v2485_v30, %v2380_v20 }
0x11d8   :  { %2400 = vst.msk [vmem:[%s4094_s19 + $0x20] sm:$0xff] %vm109_vm0, %v2392_v60  ;;  %v2393_v62 = vadd.f32 %v2485_v30, %v2378_v55 }
0x11d9   :  { %2403 = vst.msk [vmem:[%s4094_s19 + $0x38] sm:$0xff] %vm109_vm0, %v2395_v61 }
0x11da   :  { %2401 = vst.msk [vmem:[%s4094_s19 + $0x28] sm:$0xff] %vm109_vm0, %v2393_v62 }

</bundles_post_ra>
